<compile_context>
chip_gen: v5e
topology: v5e:2x2
jax: 0.10.0
libtpu: 0.0.40
codegen_flags: <defaults>
</compile_context>

<pallas_src>
import functools

import jax
import jax.numpy as jnp
from jax.experimental import pallas as pl
from jax.experimental.pallas import tpu as pltpu

EPS = 1e-5
SUBLANE = 8


def _round_up(x, m):
    return (x + m - 1) // m * m


def _mxu_pad(n):
    # 256-wide MXUs on v6e/v7x: pad to 256 only when the dim is already large
    # enough to use it; small layers stay at 128 (memory-bound anyway, and it
    # keeps zero-pad DMA waste low).
    return _round_up(n, 256 if n >= 256 else 128)


@functools.lru_cache(maxsize=None)
def _vmem_limit_bytes():
    # Never request the full physical VMEM (v7x has only 64 MiB per core);
    # ~75% of capacity leaves room for compiler scratch / semaphores.
    cap = 128 * 1024 * 1024
    try:
        info = pltpu.get_tpu_info()
        cap = int(getattr(info, "vmem_capacity_bytes", cap))
    except Exception:
        pass
    return int(cap * 3 // 4)


def _pad2d(x, rows, cols):
    r, c = x.shape
    return jnp.pad(x, ((0, rows - r), (0, cols - c)))


def _pad_row(v, n_pad):
    v = v.reshape(1, -1).astype(jnp.float32)
    return jnp.pad(v, ((0, 0), (0, n_pad - v.shape[1])))


# ---------------------------------------------------------------------------
# Kernel 1: tiled matmul (bf16 MXU feed, f32 acc) + per-tile sublane-partial
# per-channel sum / sum-of-squares.  Every grid step writes its own output
# blocks -> the M axis is "parallel" (megacore shardable on v7x).  Optionally
# also runs the fused 1x1 projection-shortcut matmul in the same pass.
# ---------------------------------------------------------------------------
def _make_matmul_stats_kernel(has_shortcut):
    def kernel(*refs):
        if has_shortcut:
            (p_ref, w_ref, ps_ref, ws_ref,
             y_ref, ys_ref, s_ref, sq_ref, ss_ref, ssq_ref) = refs
        else:
            p_ref, w_ref, y_ref, s_ref, sq_ref = refs

        def one(p_r, w_r, y_r, s_r, sq_r):
            # f32 accumulator on the MXU; stats are taken from it BEFORE the
            # (possibly bf16) store so precision of the batch stats is kept.
            y = jnp.dot(p_r[...], w_r[...], preferred_element_type=jnp.float32)
            y_r[...] = y.astype(y_r.dtype)
            tm, n = y.shape
            # Sublane-group partial sums: tile-aligned (8, n) slab adds on the
            # VPU only; the final 8->1 cross-sublane reduce happens once in
            # the (tiny) wrapper fusion, not per tile.
            part_s = jnp.zeros((SUBLANE, n), jnp.float32)
            part_sq = jnp.zeros((SUBLANE, n), jnp.float32)
            for g in range(tm // SUBLANE):
                blk = y[g * SUBLANE:(g + 1) * SUBLANE, :]
                part_s = part_s + blk
                part_sq = part_sq + blk * blk
            s_r[...] = part_s
            sq_r[...] = part_sq

        one(p_ref, w_ref, y_ref, s_ref, sq_ref)
        if has_shortcut:
            one(ps_ref, ws_ref, ys_ref, ss_ref, ssq_ref)

    return kernel


def _matmul_stats(patches, w2d, patches_sc=None, w_sc=None, *, tile_m,
                  y_dtype=jnp.float32, y_sc_dtype=jnp.float32):
    """patches: [M_pad, K_pad] bf16, w2d: [K_pad, N_pad] bf16.
    Returns (y, s_part, sq_part) or (y, ys, s_part, sq_part, ss_part, ssq_part);
    *_part have shape [num_tiles*8, N_pad] (f32) and are reduced by caller."""
    m_pad, k_pad = patches.shape
    n_pad = w2d.shape[1]
    num_tiles = m_pad // tile_m
    has_shortcut = patches_sc is not None

    tile_in = pl.BlockSpec((tile_m, k_pad), lambda i: (i, 0))
    w_spec = pl.BlockSpec((k_pad, n_pad), lambda i: (0, 0))      # resident
    tile_out = pl.BlockSpec((tile_m, n_pad), lambda i: (i, 0))
    stat_spec = pl.BlockSpec((SUBLANE, n_pad), lambda i: (i, 0))
    stat_shape = jax.ShapeDtypeStruct((num_tiles * SUBLANE, n_pad), jnp.float32)

    inputs = [patches, w2d]
    in_specs = [tile_in, w_spec]
    out_shape = [jax.ShapeDtypeStruct((m_pad, n_pad), y_dtype)]
    out_specs = [tile_out]
    if has_shortcut:
        ks_pad = patches_sc.shape[1]
        inputs += [patches_sc, w_sc]
        in_specs += [pl.BlockSpec((tile_m, ks_pad), lambda i: (i, 0)),
                     pl.BlockSpec((ks_pad, n_pad), lambda i: (0, 0))]
        out_shape.append(jax.ShapeDtypeStruct((m_pad, n_pad), y_sc_dtype))
        out_specs.append(tile_out)

    n_stats = 4 if has_shortcut else 2
    out_shape += [stat_shape] * n_stats
    out_specs += [stat_spec] * n_stats

    return pl.pallas_call(
        _make_matmul_stats_kernel(has_shortcut),
        out_shape=tuple(out_shape),
        grid=(num_tiles,),
        in_specs=in_specs,
        out_specs=tuple(out_specs),
        compiler_params=pltpu.CompilerParams(
            dimension_semantics=("parallel",),   # per-tile partials -> no serialization
            vmem_limit_bytes=_vmem_limit_bytes()),
    )(*inputs)


# ---------------------------------------------------------------------------
# Wrapper-side BN fold: reduce the tiny per-tile partials and produce the
# per-channel FMA coefficients (a, b).  One small XLA fusion, KB-sized.
# ---------------------------------------------------------------------------
def _fold_bn(s_part, sq_part, gamma_row, beta_row, m_total, eps=EPS):
    s = jnp.sum(s_part, axis=0, keepdims=True)
    sq = jnp.sum(sq_part, axis=0, keepdims=True)
    mean = s / float(m_total)
    var = jnp.maximum(sq / float(m_total) - mean * mean, 0.0)
    a = gamma_row * jax.lax.rsqrt(var + eps)
    b = beta_row - mean * a
    return a, b


# ---------------------------------------------------------------------------
# Kernel 2: folded batch-norm apply (single FMA) + optional residual + ReLU.
# Pure streaming, tiled over M, "parallel".
# ---------------------------------------------------------------------------
def _make_bn_apply_kernel(mode):
    def kernel(*refs):
        if mode == "plain":
            y_ref, a_ref, b_ref, o_ref = refs
        elif mode == "add_identity":
            y_ref, r_ref, a_ref, b_ref, o_ref = refs
        else:  # "add_bn_shortcut"
            y_ref, ys_ref, a_ref, b_ref, as_ref, bs_ref, o_ref = refs

        out = y_ref[...].astype(jnp.float32) * a_ref[...] + b_ref[...]
        if mode == "add_identity":
            out = out + r_ref[...].astype(jnp.float32)
        elif mode == "add_bn_shortcut":
            out = out + ys_ref[...].astype(jnp.float32) * as_ref[...] + bs_ref[...]
        o_ref[...] = jnp.maximum(out, 0.0).astype(o_ref.dtype)

    return kernel


def _bn_apply(y, a, b, *, mode, tile_m, residual=None, ys=None,
              a_s=None, b_s=None, out_dtype=jnp.float32):
    m_pad, n_pad = y.shape
    tile_spec = pl.BlockSpec((tile_m, n_pad), lambda i: (i, 0))
    row_spec = pl.BlockSpec((1, n_pad), lambda i: (0, 0))

    if mode == "plain":
        inputs = [y, a, b]
        in_specs = [tile_spec, row_spec, row_spec]
    elif mode == "add_identity":
        inputs = [y, residual, a, b]
        in_specs = [tile_spec, tile_spec, row_spec, row_spec]
    else:  # "add_bn_shortcut"
        inputs = [y, ys, a, b, a_s, b_s]
        in_specs = [tile_spec, tile_spec] + [row_spec] * 4

    return pl.pallas_call(
        _make_bn_apply_kernel(mode),
        out_shape=jax.ShapeDtypeStruct((m_pad, n_pad), out_dtype),
        grid=(m_pad // tile_m,),
        in_specs=in_specs,
        out_specs=tile_spec,
        compiler_params=pltpu.CompilerParams(
            dimension_semantics=("parallel",),
            vmem_limit_bytes=_vmem_limit_bytes()),
    )(*inputs)


# ---------------------------------------------------------------------------
# Plain-JAX glue: im2col patch extraction (pure reshapes/slices, no math).
# ---------------------------------------------------------------------------
def _im2col(x_nhwc, ksize, stride, pad):
    B, H, W, C = x_nhwc.shape
    xp = jnp.pad(x_nhwc, ((0, 0), (pad, pad), (pad, pad), (0, 0)))
    Ho = (H + 2 * pad - ksize) // stride + 1
    Wo = (W + 2 * pad - ksize) // stride + 1
    cols = []
    for kh in range(ksize):
        for kw in range(ksize):
            cols.append(
                xp[:, kh:kh + (Ho - 1) * stride + 1:stride,
                      kw:kw + (Wo - 1) * stride + 1:stride, :])
    patches = jnp.concatenate(cols, axis=-1)     # [B, Ho, Wo, k*k*C]
    return patches.reshape(B * Ho * Wo, ksize * ksize * C), Ho, Wo


def _w_torch_to_mat(w):
    """PyTorch conv weight (Cout, Cin, KH, KW) -> [KH*KW*Cin, Cout]."""
    Cout, Cin, KH, KW = w.shape
    return jnp.transpose(w, (2, 3, 1, 0)).reshape(KH * KW * Cin, Cout)


# ---------------------------------------------------------------------------
# ResBlock forward
# ---------------------------------------------------------------------------
def init_resblock_params(key, in_channels, out_channels, stride):
    ks = jax.random.split(key, 3)
    params = {
        "w1": 0.1 * jax.random.normal(ks[0], (out_channels, in_channels, 3, 3), jnp.float32),
        "g1": jnp.ones((out_channels,), jnp.float32),
        "b1": jnp.zeros((out_channels,), jnp.float32),
        "w2": 0.1 * jax.random.normal(ks[1], (out_channels, out_channels, 3, 3), jnp.float32),
        "g2": jnp.ones((out_channels,), jnp.float32),
        "b2": jnp.zeros((out_channels,), jnp.float32),
    }
    if stride != 1 or in_channels != out_channels:
        params["ws"] = 0.1 * jax.random.normal(
            ks[2], (out_channels, in_channels, 1, 1), jnp.float32)
        params["gs"] = jnp.ones((out_channels,), jnp.float32)
        params["bs"] = jnp.zeros((out_channels,), jnp.float32)
    return params


def resblock_forward(x_nchw, params, stride, tile_m=1024):
    B, cin, H, W = x_nchw.shape
    cout = params["w1"].shape[0]
    has_proj = "ws" in params
    if not has_proj:
        assert stride == 1 and cin == cout, (
            "identity shortcut requires stride=1 and in_channels==out_channels")

    x_nhwc = jnp.transpose(x_nchw, (0, 2, 3, 1))          # NHWC f32
    x_bf = x_nhwc.astype(jnp.bfloat16)                    # bf16 feed for the MXU
    n_pad = _mxu_pad(cout)

    # ---- conv1 + bn1 + relu ------------------------------------------------
    p1, ho, wo = _im2col(x_bf, 3, stride, 1)              # [M, 9*cin] bf16
    m = B * ho * wo
    tm = min(_round_up(tile_m, SUBLANE), _round_up(m, SUBLANE))
    m_pad = _round_up(m, tm)
    k1_pad = _mxu_pad(p1.shape[1])
    p1 = _pad2d(p1, m_pad, k1_pad)
    w1 = _pad2d(_w_torch_to_mat(params["w1"]), k1_pad, n_pad).astype(jnp.bfloat16)

    # y1 stored as bf16 (stats taken from the f32 accumulator in-kernel).
    y1, s1p, sq1p = _matmul_stats(p1, w1, tile_m=tm, y_dtype=jnp.bfloat16)
    a1, b1 = _fold_bn(s1p, sq1p, _pad_row(params["g1"], n_pad),
                      _pad_row(params["b1"], n_pad), m)
    out1 = _bn_apply(y1, a1, b1, mode="plain", tile_m=tm, out_dtype=jnp.bfloat16)
    out1_img = out1[:m, :cout].reshape(B, ho, wo, cout)

    # ---- conv2 + bn2 (+ fused projection shortcut) + add + relu ------------
    p2, _, _ = _im2col(out1_img, 3, 1, 1)                 # [M, 9*cout] bf16
    k2_pad = _mxu_pad(p2.shape[1])
    p2 = _pad2d(p2, m_pad, k2_pad)
    w2 = _pad2d(_w_torch_to_mat(params["w2"]), k2_pad, n_pad).astype(jnp.bfloat16)
    g2 = _pad_row(params["g2"], n_pad)
    bb2 = _pad_row(params["b2"], n_pad)

    if has_proj:
        xs = x_bf[:, ::stride, ::stride, :]               # 1x1 conv (stride s) inputs
        ks_pad = _mxu_pad(cin)
        ps = _pad2d(xs.reshape(m, cin), m_pad, ks_pad)
        ws = _pad2d(_w_torch_to_mat(params["ws"]), ks_pad, n_pad).astype(jnp.bfloat16)

        y2, ysc, s2p, sq2p, ssp, ssqp = _matmul_stats(p2, w2, ps, ws, tile_m=tm)
        a2, b2 = _fold_bn(s2p, sq2p, g2, bb2, m)
        a_s, b_s = _fold_bn(ssp, ssqp, _pad_row(params["gs"], n_pad),
                            _pad_row(params["bs"], n_pad), m)
        out2 = _bn_apply(y2, a2, b2, mode="add_bn_shortcut", tile_m=tm,
                         ys=ysc, a_s=a_s, b_s=b_s, out_dtype=jnp.float32)
    else:
        res = _pad2d(x_nhwc.reshape(m, cin), m_pad, n_pad)   # identity residual, f32
        y2, s2p, sq2p = _matmul_stats(p2, w2, tile_m=tm)
        a2, b2 = _fold_bn(s2p, sq2p, g2, bb2, m)
        out2 = _bn_apply(y2, a2, b2, mode="add_identity", tile_m=tm,
                         residual=res, out_dtype=jnp.float32)

    out = out2[:m, :cout].reshape(B, ho, wo, cout)
    return jnp.transpose(out, (0, 3, 1, 2))               # back to NCHW


# ---------------------------------------------------------------------------
# Pure-JAX reference (mirrors the kernel's bf16 MXU feed / f32 accumulation).
# ---------------------------------------------------------------------------
def _ref_conv(x_nchw, w, stride, pad):
    return jax.lax.conv_general_dilated(
        x_nchw.astype(jnp.bfloat16), w.astype(jnp.bfloat16),
        window_strides=(stride, stride),
        padding=[(pad, pad), (pad, pad)],
        dimension_numbers=("NCHW", "OIHW", "NCHW"),
        preferred_element_type=jnp.float32)


def _ref_bn(y_nchw, gamma, beta):
    mean = jnp.mean(y_nchw, axis=(0, 2, 3), keepdims=True)
    var = jnp.mean((y_nchw - mean) ** 2, axis=(0, 2, 3), keepdims=True)
    yh = (y_nchw - mean) * jax.lax.rsqrt(var + EPS)
    return yh * gamma.reshape(1, -1, 1, 1) + beta.reshape(1, -1, 1, 1)


def resblock_reference(x_nchw, params, stride):
    out = _ref_conv(x_nchw, params["w1"], stride, 1)
    out = jnp.maximum(_ref_bn(out, params["g1"], params["b1"]), 0.0)
    out = _ref_conv(out, params["w2"], 1, 1)
    out = _ref_bn(out, params["g2"], params["b2"])
    if "ws" in params:
        res = _ref_conv(x_nchw, params["ws"], stride, 0)
        res = _ref_bn(res, params["gs"], params["bs"])
    else:
        res = x_nchw
    return jnp.maximum(out + res, 0.0)


if __name__ == "__main__":
    key = jax.random.PRNGKey(0)

    configs = [
        (2, 4, 16, 16, 8, 2),   # projection-shortcut path (stride 2, C change)
        (2, 8, 8, 8, 8, 1),     # identity-shortcut path
    ]
    for idx, (B, cin, H, W, cout, stride) in enumerate(configs):
        k_x, k_p, key = jax.random.split(key, 3)
        x = jax.random.normal(k_x, (B, cin, H, W), jnp.float32)
        params = init_resblock_params(k_p, cin, cout, stride)

        fwd = jax.jit(functools.partial(resblock_forward, stride=stride))
        out = jax.block_until_ready(fwd(x, params))
        ref = jax.block_until_ready(resblock_reference(x, params, stride))

        assert out.shape == ref.shape, (out.shape, ref.shape)
        err = float(jnp.max(jnp.abs(out - ref)))
        # Tolerance covers bf16 storage of the inter-conv activation (and of
        # y1 pre-BN), ~4e-3 relative, on top of the bf16 MXU feeds.
        assert jnp.allclose(out, ref, atol=1e-2, rtol=1e-2), (
            f"config {idx}: mismatch vs reference, max abs err {err}")

    print("KERNEL_OK")
</pallas_src>

<mosaic_0001>
module attributes {stable_mosaic.version = 11 : i64} {
  func.func @kernel(%arg0: i32, %arg1: memref<128x128xbf16, #tpu.memory_space<vmem>>, %arg2: memref<128x128xbf16, #tpu.memory_space<vmem>>, %arg3: memref<128x128xbf16, #tpu.memory_space<vmem>>, %arg4: memref<8x128xf32, #tpu.memory_space<vmem>>, %arg5: memref<8x128xf32, #tpu.memory_space<vmem>>) attributes {dimension_semantics = [#tpu.dimension_semantics<parallel>], iteration_bounds = array<i64: 1>, scalar_prefetch = 0 : i64, scratch_operands = 0 : i64, tpu.core_type = #tpu.core_type<tc>, window_params = [{transform_indices = @transform_0, window_bounds = array<i64: 128, 128>}, {pipeline_mode = #tpu.pipeline_mode<synchronous>, transform_indices = @transform_1, window_bounds = array<i64: 128, 128>}, {transform_indices = @transform_2, window_bounds = array<i64: 128, 128>}, {transform_indices = @transform_3, window_bounds = array<i64: 8, 128>}, {transform_indices = @transform_4, window_bounds = array<i64: 8, 128>}]} {
    %c0 = arith.constant 0 : index
    %c0_0 = arith.constant 0 : index
    %0 = vector.load %arg1[%c0, %c0_0] : memref<128x128xbf16, #tpu.memory_space<vmem>>, vector<128x128xbf16>
    %c0_1 = arith.constant 0 : index
    %c0_2 = arith.constant 0 : index
    %1 = vector.load %arg2[%c0_1, %c0_2] : memref<128x128xbf16, #tpu.memory_space<vmem>>, vector<128x128xbf16>
    %cst = arith.constant dense<0.000000e+00> : vector<128x128xf32>
    %2 = tpu.matmul %0, %1, %cst {dimension_numbers = #tpu.dot_dimension_numbers<[1], [0], [0], [1], [0, 0, 1, 1], [], []>} : vector<128x128xbf16>, vector<128x128xbf16>, vector<128x128xf32> -> vector<128x128xf32>
    %3 = arith.truncf %2 : vector<128x128xf32> to vector<128x128xbf16>
    %c0_3 = arith.constant 0 : index
    %c0_4 = arith.constant 0 : index
    %4 = vector.load %arg3[%c0_3, %c0_4] : memref<128x128xbf16, #tpu.memory_space<vmem>>, vector<128x128xbf16>
    tpu.vector_store %arg3[%c0_3, %c0_4], %3 {strides = array<i32>} : memref<128x128xbf16, #tpu.memory_space<vmem>>, vector<128x128xbf16>,
    %cst_5 = arith.constant 0.000000e+00 : f32
    %5 = vector.broadcast %cst_5 : f32 to vector<8x128xf32>
    %cst_6 = arith.constant 0.000000e+00 : f32
    %6 = vector.broadcast %cst_6 : f32 to vector<8x128xf32>
    %7 = vector.extract_strided_slice %2 {offsets = [0, 0], sizes = [8, 128], strides = [1, 1]} : vector<128x128xf32> to vector<8x128xf32>
    %8 = arith.addf %5, %7 : vector<8x128xf32>
    %9 = arith.mulf %7, %7 : vector<8x128xf32>
    %10 = arith.addf %6, %9 : vector<8x128xf32>
    %11 = vector.extract_strided_slice %2 {offsets = [8, 0], sizes = [8, 128], strides = [1, 1]} : vector<128x128xf32> to vector<8x128xf32>
    %12 = arith.addf %8, %11 : vector<8x128xf32>
    %13 = arith.mulf %11, %11 : vector<8x128xf32>
    %14 = arith.addf %10, %13 : vector<8x128xf32>
    %15 = vector.extract_strided_slice %2 {offsets = [16, 0], sizes = [8, 128], strides = [1, 1]} : vector<128x128xf32> to vector<8x128xf32>
    %16 = arith.addf %12, %15 : vector<8x128xf32>
    %17 = arith.mulf %15, %15 : vector<8x128xf32>
    %18 = arith.addf %14, %17 : vector<8x128xf32>
    %19 = vector.extract_strided_slice %2 {offsets = [24, 0], sizes = [8, 128], strides = [1, 1]} : vector<128x128xf32> to vector<8x128xf32>
    %20 = arith.addf %16, %19 : vector<8x128xf32>
    %21 = arith.mulf %19, %19 : vector<8x128xf32>
    %22 = arith.addf %18, %21 : vector<8x128xf32>
    %23 = vector.extract_strided_slice %2 {offsets = [32, 0], sizes = [8, 128], strides = [1, 1]} : vector<128x128xf32> to vector<8x128xf32>
    %24 = arith.addf %20, %23 : vector<8x128xf32>
    %25 = arith.mulf %23, %23 : vector<8x128xf32>
    %26 = arith.addf %22, %25 : vector<8x128xf32>
    %27 = vector.extract_strided_slice %2 {offsets = [40, 0], sizes = [8, 128], strides = [1, 1]} : vector<128x128xf32> to vector<8x128xf32>
    %28 = arith.addf %24, %27 : vector<8x128xf32>
    %29 = arith.mulf %27, %27 : vector<8x128xf32>
    %30 = arith.addf %26, %29 : vector<8x128xf32>
    %31 = vector.extract_strided_slice %2 {offsets = [48, 0], sizes = [8, 128], strides = [1, 1]} : vector<128x128xf32> to vector<8x128xf32>
    %32 = arith.addf %28, %31 : vector<8x128xf32>
    %33 = arith.mulf %31, %31 : vector<8x128xf32>
    %34 = arith.addf %30, %33 : vector<8x128xf32>
    %35 = vector.extract_strided_slice %2 {offsets = [56, 0], sizes = [8, 128], strides = [1, 1]} : vector<128x128xf32> to vector<8x128xf32>
    %36 = arith.addf %32, %35 : vector<8x128xf32>
    %37 = arith.mulf %35, %35 : vector<8x128xf32>
    %38 = arith.addf %34, %37 : vector<8x128xf32>
    %39 = vector.extract_strided_slice %2 {offsets = [64, 0], sizes = [8, 128], strides = [1, 1]} : vector<128x128xf32> to vector<8x128xf32>
    %40 = arith.addf %36, %39 : vector<8x128xf32>
    %41 = arith.mulf %39, %39 : vector<8x128xf32>
    %42 = arith.addf %38, %41 : vector<8x128xf32>
    %43 = vector.extract_strided_slice %2 {offsets = [72, 0], sizes = [8, 128], strides = [1, 1]} : vector<128x128xf32> to vector<8x128xf32>
    %44 = arith.addf %40, %43 : vector<8x128xf32>
    %45 = arith.mulf %43, %43 : vector<8x128xf32>
    %46 = arith.addf %42, %45 : vector<8x128xf32>
    %47 = vector.extract_strided_slice %2 {offsets = [80, 0], sizes = [8, 128], strides = [1, 1]} : vector<128x128xf32> to vector<8x128xf32>
    %48 = arith.addf %44, %47 : vector<8x128xf32>
    %49 = arith.mulf %47, %47 : vector<8x128xf32>
    %50 = arith.addf %46, %49 : vector<8x128xf32>
    %51 = vector.extract_strided_slice %2 {offsets = [88, 0], sizes = [8, 128], strides = [1, 1]} : vector<128x128xf32> to vector<8x128xf32>
    %52 = arith.addf %48, %51 : vector<8x128xf32>
    %53 = arith.mulf %51, %51 : vector<8x128xf32>
    %54 = arith.addf %50, %53 : vector<8x128xf32>
    %55 = vector.extract_strided_slice %2 {offsets = [96, 0], sizes = [8, 128], strides = [1, 1]} : vector<128x128xf32> to vector<8x128xf32>
    %56 = arith.addf %52, %55 : vector<8x128xf32>
    %57 = arith.mulf %55, %55 : vector<8x128xf32>
    %58 = arith.addf %54, %57 : vector<8x128xf32>
    %59 = vector.extract_strided_slice %2 {offsets = [104, 0], sizes = [8, 128], strides = [1, 1]} : vector<128x128xf32> to vector<8x128xf32>
    %60 = arith.addf %56, %59 : vector<8x128xf32>
    %61 = arith.mulf %59, %59 : vector<8x128xf32>
    %62 = arith.addf %58, %61 : vector<8x128xf32>
    %63 = vector.extract_strided_slice %2 {offsets = [112, 0], sizes = [8, 128], strides = [1, 1]} : vector<128x128xf32> to vector<8x128xf32>
    %64 = arith.addf %60, %63 : vector<8x128xf32>
    %65 = arith.mulf %63, %63 : vector<8x128xf32>
    %66 = arith.addf %62, %65 : vector<8x128xf32>
    %67 = vector.extract_strided_slice %2 {offsets = [120, 0], sizes = [8, 128], strides = [1, 1]} : vector<128x128xf32> to vector<8x128xf32>
    %68 = arith.addf %64, %67 : vector<8x128xf32>
    %69 = arith.mulf %67, %67 : vector<8x128xf32>
    %70 = arith.addf %66, %69 : vector<8x128xf32>
    %c0_7 = arith.constant 0 : index
    %c0_8 = arith.constant 0 : index
    %71 = vector.load %arg4[%c0_7, %c0_8] : memref<8x128xf32, #tpu.memory_space<vmem>>, vector<8x128xf32>
    tpu.vector_store %arg4[%c0_7, %c0_8], %68 {strides = array<i32>} : memref<8x128xf32, #tpu.memory_space<vmem>>, vector<8x128xf32>,
    %c0_9 = arith.constant 0 : index
    %c0_10 = arith.constant 0 : index
    %72 = vector.load %arg5[%c0_9, %c0_10] : memref<8x128xf32, #tpu.memory_space<vmem>>, vector<8x128xf32>
    tpu.vector_store %arg5[%c0_9, %c0_10], %70 {strides = array<i32>} : memref<8x128xf32, #tpu.memory_space<vmem>>, vector<8x128xf32>,
    return
  }
  func.func @transform_0(%arg0: i32) -> (i32, i32) {
    %c0_i32 = arith.constant 0 : i32
    %c0_i32_0 = arith.constant 0 : i32
    return %arg0, %c0_i32 : i32, i32
  }
  func.func @transform_1(%arg0: i32) -> (i32, i32) {
    %c0_i32 = arith.constant 0 : i32
    %c0_i32_0 = arith.constant 0 : i32
    %c0_i32_1 = arith.constant 0 : i32
    return %c0_i32, %c0_i32_0 : i32, i32
  }
  func.func @transform_2(%arg0: i32) -> (i32, i32) {
    %c0_i32 = arith.constant 0 : i32
    %c0_i32_0 = arith.constant 0 : i32
    return %arg0, %c0_i32 : i32, i32
  }
  func.func @transform_3(%arg0: i32) -> (i32, i32) {
    %c0_i32 = arith.constant 0 : i32
    %c0_i32_0 = arith.constant 0 : i32
    return %arg0, %c0_i32 : i32, i32
  }
  func.func @transform_4(%arg0: i32) -> (i32, i32) {
    %c0_i32 = arith.constant 0 : i32
    %c0_i32_0 = arith.constant 0 : i32
    return %arg0, %c0_i32 : i32, i32
  }
}

module attributes {stable_mosaic.version = 11 : i64} {
  func.func @kernel(%arg0: i32, %arg1: memref<128x128xbf16, #tpu.memory_space<vmem>>, %arg2: memref<1x128xf32, #tpu.memory_space<vmem>>, %arg3: memref<1x128xf32, #tpu.memory_space<vmem>>, %arg4: memref<128x128xbf16, #tpu.memory_space<vmem>>) attributes {dimension_semantics = [#tpu.dimension_semantics<parallel>], iteration_bounds = array<i64: 1>, scalar_prefetch = 0 : i64, scratch_operands = 0 : i64, tpu.core_type = #tpu.core_type<tc>, window_params = [{transform_indices = @transform_0, window_bounds = array<i64: 128, 128>}, {pipeline_mode = #tpu.pipeline_mode<synchronous>, transform_indices = @transform_1, window_bounds = array<i64: 1, 128>}, {pipeline_mode = #tpu.pipeline_mode<synchronous>, transform_indices = @transform_2, window_bounds = array<i64: 1, 128>}, {transform_indices = @transform_3, window_bounds = array<i64: 128, 128>}]} {
    %c0 = arith.constant 0 : index
    %c0_0 = arith.constant 0 : index
    %0 = vector.load %arg1[%c0, %c0_0] : memref<128x128xbf16, #tpu.memory_space<vmem>>, vector<128x128xbf16>
    %1 = arith.extf %0 : vector<128x128xbf16> to vector<128x128xf32>
    %c0_1 = arith.constant 0 : index
    %c0_2 = arith.constant 0 : index
    %2 = vector.load %arg2[%c0_1, %c0_2] : memref<1x128xf32, #tpu.memory_space<vmem>>, vector<1x128xf32>
    %3 = vector.broadcast %2 : vector<1x128xf32> to vector<128x128xf32>
    %4 = arith.mulf %1, %3 : vector<128x128xf32>
    %c0_3 = arith.constant 0 : index
    %c0_4 = arith.constant 0 : index
    %5 = vector.load %arg3[%c0_3, %c0_4] : memref<1x128xf32, #tpu.memory_space<vmem>>, vector<1x128xf32>
    %6 = vector.broadcast %5 : vector<1x128xf32> to vector<128x128xf32>
    %7 = arith.addf %4, %6 : vector<128x128xf32>
    %cst = arith.constant 0.000000e+00 : f32
    %8 = vector.broadcast %cst : f32 to vector<128x128xf32>
    %9 = arith.maximumf %7, %8 : vector<128x128xf32>
    %10 = arith.truncf %9 : vector<128x128xf32> to vector<128x128xbf16>
    %c0_5 = arith.constant 0 : index
    %c0_6 = arith.constant 0 : index
    %11 = vector.load %arg4[%c0_5, %c0_6] : memref<128x128xbf16, #tpu.memory_space<vmem>>, vector<128x128xbf16>
    tpu.vector_store %arg4[%c0_5, %c0_6], %10 {strides = array<i32>} : memref<128x128xbf16, #tpu.memory_space<vmem>>, vector<128x128xbf16>,
    return
  }
  func.func @transform_0(%arg0: i32) -> (i32, i32) {
    %c0_i32 = arith.constant 0 : i32
    %c0_i32_0 = arith.constant 0 : i32
    return %arg0, %c0_i32 : i32, i32
  }
  func.func @transform_1(%arg0: i32) -> (i32, i32) {
    %c0_i32 = arith.constant 0 : i32
    %c0_i32_0 = arith.constant 0 : i32
    %c0_i32_1 = arith.constant 0 : i32
    return %c0_i32, %c0_i32_0 : i32, i32
  }
  func.func @transform_2(%arg0: i32) -> (i32, i32) {
    %c0_i32 = arith.constant 0 : i32
    %c0_i32_0 = arith.constant 0 : i32
    %c0_i32_1 = arith.constant 0 : i32
    return %c0_i32, %c0_i32_0 : i32, i32
  }
  func.func @transform_3(%arg0: i32) -> (i32, i32) {
    %c0_i32 = arith.constant 0 : i32
    %c0_i32_0 = arith.constant 0 : i32
    return %arg0, %c0_i32 : i32, i32
  }
}

module attributes {stable_mosaic.version = 11 : i64} {
  func.func @kernel(%arg0: i32, %arg1: memref<128x128xbf16, #tpu.memory_space<vmem>>, %arg2: memref<128x128xbf16, #tpu.memory_space<vmem>>, %arg3: memref<128x128xbf16, #tpu.memory_space<vmem>>, %arg4: memref<128x128xbf16, #tpu.memory_space<vmem>>, %arg5: memref<128x128xf32, #tpu.memory_space<vmem>>, %arg6: memref<128x128xf32, #tpu.memory_space<vmem>>, %arg7: memref<8x128xf32, #tpu.memory_space<vmem>>, %arg8: memref<8x128xf32, #tpu.memory_space<vmem>>, %arg9: memref<8x128xf32, #tpu.memory_space<vmem>>, %arg10: memref<8x128xf32, #tpu.memory_space<vmem>>) attributes {dimension_semantics = [#tpu.dimension_semantics<parallel>], iteration_bounds = array<i64: 1>, scalar_prefetch = 0 : i64, scratch_operands = 0 : i64, tpu.core_type = #tpu.core_type<tc>, window_params = [{transform_indices = @transform_0, window_bounds = array<i64: 128, 128>}, {pipeline_mode = #tpu.pipeline_mode<synchronous>, transform_indices = @transform_1, window_bounds = array<i64: 128, 128>}, {transform_indices = @transform_2, window_bounds = array<i64: 128, 128>}, {pipeline_mode = #tpu.pipeline_mode<synchronous>, transform_indices = @transform_3, window_bounds = array<i64: 128, 128>}, {transform_indices = @transform_4, window_bounds = array<i64: 128, 128>}, {transform_indices = @transform_5, window_bounds = array<i64: 128, 128>}, {transform_indices = @transform_6, window_bounds = array<i64: 8, 128>}, {transform_indices = @transform_7, window_bounds = array<i64: 8, 128>}, {transform_indices = @transform_8, window_bounds = array<i64: 8, 128>}, {transform_indices = @transform_9, window_bounds = array<i64: 8, 128>}]} {
    %c0 = arith.constant 0 : index
    %c0_0 = arith.constant 0 : index
    %0 = vector.load %arg1[%c0, %c0_0] : memref<128x128xbf16, #tpu.memory_space<vmem>>, vector<128x128xbf16>
    %c0_1 = arith.constant 0 : index
    %c0_2 = arith.constant 0 : index
    %1 = vector.load %arg2[%c0_1, %c0_2] : memref<128x128xbf16, #tpu.memory_space<vmem>>, vector<128x128xbf16>
    %cst = arith.constant dense<0.000000e+00> : vector<128x128xf32>
    %2 = tpu.matmul %0, %1, %cst {dimension_numbers = #tpu.dot_dimension_numbers<[1], [0], [0], [1], [0, 0, 1, 1], [], []>} : vector<128x128xbf16>, vector<128x128xbf16>, vector<128x128xf32> -> vector<128x128xf32>
    %c0_3 = arith.constant 0 : index
    %c0_4 = arith.constant 0 : index
    %3 = vector.load %arg5[%c0_3, %c0_4] : memref<128x128xf32, #tpu.memory_space<vmem>>, vector<128x128xf32>
    tpu.vector_store %arg5[%c0_3, %c0_4], %2 {strides = array<i32>} : memref<128x128xf32, #tpu.memory_space<vmem>>, vector<128x128xf32>,
    %cst_5 = arith.constant 0.000000e+00 : f32
    %4 = vector.broadcast %cst_5 : f32 to vector<8x128xf32>
    %cst_6 = arith.constant 0.000000e+00 : f32
    %5 = vector.broadcast %cst_6 : f32 to vector<8x128xf32>
    %6 = vector.extract_strided_slice %2 {offsets = [0, 0], sizes = [8, 128], strides = [1, 1]} : vector<128x128xf32> to vector<8x128xf32>
    %7 = arith.addf %4, %6 : vector<8x128xf32>
    %8 = arith.mulf %6, %6 : vector<8x128xf32>
    %9 = arith.addf %5, %8 : vector<8x128xf32>
    %10 = vector.extract_strided_slice %2 {offsets = [8, 0], sizes = [8, 128], strides = [1, 1]} : vector<128x128xf32> to vector<8x128xf32>
    %11 = arith.addf %7, %10 : vector<8x128xf32>
    %12 = arith.mulf %10, %10 : vector<8x128xf32>
    %13 = arith.addf %9, %12 : vector<8x128xf32>
    %14 = vector.extract_strided_slice %2 {offsets = [16, 0], sizes = [8, 128], strides = [1, 1]} : vector<128x128xf32> to vector<8x128xf32>
    %15 = arith.addf %11, %14 : vector<8x128xf32>
    %16 = arith.mulf %14, %14 : vector<8x128xf32>
    %17 = arith.addf %13, %16 : vector<8x128xf32>
    %18 = vector.extract_strided_slice %2 {offsets = [24, 0], sizes = [8, 128], strides = [1, 1]} : vector<128x128xf32> to vector<8x128xf32>
    %19 = arith.addf %15, %18 : vector<8x128xf32>
    %20 = arith.mulf %18, %18 : vector<8x128xf32>
    %21 = arith.addf %17, %20 : vector<8x128xf32>
    %22 = vector.extract_strided_slice %2 {offsets = [32, 0], sizes = [8, 128], strides = [1, 1]} : vector<128x128xf32> to vector<8x128xf32>
    %23 = arith.addf %19, %22 : vector<8x128xf32>
    %24 = arith.mulf %22, %22 : vector<8x128xf32>
    %25 = arith.addf %21, %24 : vector<8x128xf32>
    %26 = vector.extract_strided_slice %2 {offsets = [40, 0], sizes = [8, 128], strides = [1, 1]} : vector<128x128xf32> to vector<8x128xf32>
    %27 = arith.addf %23, %26 : vector<8x128xf32>
    %28 = arith.mulf %26, %26 : vector<8x128xf32>
    %29 = arith.addf %25, %28 : vector<8x128xf32>
    %30 = vector.extract_strided_slice %2 {offsets = [48, 0], sizes = [8, 128], strides = [1, 1]} : vector<128x128xf32> to vector<8x128xf32>
    %31 = arith.addf %27, %30 : vector<8x128xf32>
    %32 = arith.mulf %30, %30 : vector<8x128xf32>
    %33 = arith.addf %29, %32 : vector<8x128xf32>
    %34 = vector.extract_strided_slice %2 {offsets = [56, 0], sizes = [8, 128], strides = [1, 1]} : vector<128x128xf32> to vector<8x128xf32>
    %35 = arith.addf %31, %34 : vector<8x128xf32>
    %36 = arith.mulf %34, %34 : vector<8x128xf32>
    %37 = arith.addf %33, %36 : vector<8x128xf32>
    %38 = vector.extract_strided_slice %2 {offsets = [64, 0], sizes = [8, 128], strides = [1, 1]} : vector<128x128xf32> to vector<8x128xf32>
    %39 = arith.addf %35, %38 : vector<8x128xf32>
    %40 = arith.mulf %38, %38 : vector<8x128xf32>
    %41 = arith.addf %37, %40 : vector<8x128xf32>
    %42 = vector.extract_strided_slice %2 {offsets = [72, 0], sizes = [8, 128], strides = [1, 1]} : vector<128x128xf32> to vector<8x128xf32>
    %43 = arith.addf %39, %42 : vector<8x128xf32>
    %44 = arith.mulf %42, %42 : vector<8x128xf32>
    %45 = arith.addf %41, %44 : vector<8x128xf32>
    %46 = vector.extract_strided_slice %2 {offsets = [80, 0], sizes = [8, 128], strides = [1, 1]} : vector<128x128xf32> to vector<8x128xf32>
    %47 = arith.addf %43, %46 : vector<8x128xf32>
    %48 = arith.mulf %46, %46 : vector<8x128xf32>
    %49 = arith.addf %45, %48 : vector<8x128xf32>
    %50 = vector.extract_strided_slice %2 {offsets = [88, 0], sizes = [8, 128], strides = [1, 1]} : vector<128x128xf32> to vector<8x128xf32>
    %51 = arith.addf %47, %50 : vector<8x128xf32>
    %52 = arith.mulf %50, %50 : vector<8x128xf32>
    %53 = arith.addf %49, %52 : vector<8x128xf32>
    %54 = vector.extract_strided_slice %2 {offsets = [96, 0], sizes = [8, 128], strides = [1, 1]} : vector<128x128xf32> to vector<8x128xf32>
    %55 = arith.addf %51, %54 : vector<8x128xf32>
    %56 = arith.mulf %54, %54 : vector<8x128xf32>
    %57 = arith.addf %53, %56 : vector<8x128xf32>
    %58 = vector.extract_strided_slice %2 {offsets = [104, 0], sizes = [8, 128], strides = [1, 1]} : vector<128x128xf32> to vector<8x128xf32>
    %59 = arith.addf %55, %58 : vector<8x128xf32>
    %60 = arith.mulf %58, %58 : vector<8x128xf32>
    %61 = arith.addf %57, %60 : vector<8x128xf32>
    %62 = vector.extract_strided_slice %2 {offsets = [112, 0], sizes = [8, 128], strides = [1, 1]} : vector<128x128xf32> to vector<8x128xf32>
    %63 = arith.addf %59, %62 : vector<8x128xf32>
    %64 = arith.mulf %62, %62 : vector<8x128xf32>
    %65 = arith.addf %61, %64 : vector<8x128xf32>
    %66 = vector.extract_strided_slice %2 {offsets = [120, 0], sizes = [8, 128], strides = [1, 1]} : vector<128x128xf32> to vector<8x128xf32>
    %67 = arith.addf %63, %66 : vector<8x128xf32>
    %68 = arith.mulf %66, %66 : vector<8x128xf32>
    %69 = arith.addf %65, %68 : vector<8x128xf32>
    %c0_7 = arith.constant 0 : index
    %c0_8 = arith.constant 0 : index
    %70 = vector.load %arg7[%c0_7, %c0_8] : memref<8x128xf32, #tpu.memory_space<vmem>>, vector<8x128xf32>
    tpu.vector_store %arg7[%c0_7, %c0_8], %67 {strides = array<i32>} : memref<8x128xf32, #tpu.memory_space<vmem>>, vector<8x128xf32>,
    %c0_9 = arith.constant 0 : index
    %c0_10 = arith.constant 0 : index
    %71 = vector.load %arg8[%c0_9, %c0_10] : memref<8x128xf32, #tpu.memory_space<vmem>>, vector<8x128xf32>
    tpu.vector_store %arg8[%c0_9, %c0_10], %69 {strides = array<i32>} : memref<8x128xf32, #tpu.memory_space<vmem>>, vector<8x128xf32>,
    %c0_11 = arith.constant 0 : index
    %c0_12 = arith.constant 0 : index
    %72 = vector.load %arg3[%c0_11, %c0_12] : memref<128x128xbf16, #tpu.memory_space<vmem>>, vector<128x128xbf16>
    %c0_13 = arith.constant 0 : index
    %c0_14 = arith.constant 0 : index
    %73 = vector.load %arg4[%c0_13, %c0_14] : memref<128x128xbf16, #tpu.memory_space<vmem>>, vector<128x128xbf16>
    %cst_15 = arith.constant dense<0.000000e+00> : vector<128x128xf32>
    %74 = tpu.matmul %72, %73, %cst_15 {dimension_numbers = #tpu.dot_dimension_numbers<[1], [0], [0], [1], [0, 0, 1, 1], [], []>} : vector<128x128xbf16>, vector<128x128xbf16>, vector<128x128xf32> -> vector<128x128xf32>
    %c0_16 = arith.constant 0 : index
    %c0_17 = arith.constant 0 : index
    %75 = vector.load %arg6[%c0_16, %c0_17] : memref<128x128xf32, #tpu.memory_space<vmem>>, vector<128x128xf32>
    tpu.vector_store %arg6[%c0_16, %c0_17], %74 {strides = array<i32>} : memref<128x128xf32, #tpu.memory_space<vmem>>, vector<128x128xf32>,
    %cst_18 = arith.constant 0.000000e+00 : f32
    %76 = vector.broadcast %cst_18 : f32 to vector<8x128xf32>
    %cst_19 = arith.constant 0.000000e+00 : f32
    %77 = vector.broadcast %cst_19 : f32 to vector<8x128xf32>
    %78 = vector.extract_strided_slice %74 {offsets = [0, 0], sizes = [8, 128], strides = [1, 1]} : vector<128x128xf32> to vector<8x128xf32>
    %79 = arith.addf %76, %78 : vector<8x128xf32>
    %80 = arith.mulf %78, %78 : vector<8x128xf32>
    %81 = arith.addf %77, %80 : vector<8x128xf32>
    %82 = vector.extract_strided_slice %74 {offsets = [8, 0], sizes = [8, 128], strides = [1, 1]} : vector<128x128xf32> to vector<8x128xf32>
    %83 = arith.addf %79, %82 : vector<8x128xf32>
    %84 = arith.mulf %82, %82 : vector<8x128xf32>
    %85 = arith.addf %81, %84 : vector<8x128xf32>
    %86 = vector.extract_strided_slice %74 {offsets = [16, 0], sizes = [8, 128], strides = [1, 1]} : vector<128x128xf32> to vector<8x128xf32>
    %87 = arith.addf %83, %86 : vector<8x128xf32>
    %88 = arith.mulf %86, %86 : vector<8x128xf32>
    %89 = arith.addf %85, %88 : vector<8x128xf32>
    %90 = vector.extract_strided_slice %74 {offsets = [24, 0], sizes = [8, 128], strides = [1, 1]} : vector<128x128xf32> to vector<8x128xf32>
    %91 = arith.addf %87, %90 : vector<8x128xf32>
    %92 = arith.mulf %90, %90 : vector<8x128xf32>
    %93 = arith.addf %89, %92 : vector<8x128xf32>
    %94 = vector.extract_strided_slice %74 {offsets = [32, 0], sizes = [8, 128], strides = [1, 1]} : vector<128x128xf32> to vector<8x128xf32>
    %95 = arith.addf %91, %94 : vector<8x128xf32>
    %96 = arith.mulf %94, %94 : vector<8x128xf32>
    %97 = arith.addf %93, %96 : vector<8x128xf32>
    %98 = vector.extract_strided_slice %74 {offsets = [40, 0], sizes = [8, 128], strides = [1, 1]} : vector<128x128xf32> to vector<8x128xf32>
    %99 = arith.addf %95, %98 : vector<8x128xf32>
    %100 = arith.mulf %98, %98 : vector<8x128xf32>
    %101 = arith.addf %97, %100 : vector<8x128xf32>
    %102 = vector.extract_strided_slice %74 {offsets = [48, 0], sizes = [8, 128], strides = [1, 1]} : vector<128x128xf32> to vector<8x128xf32>
    %103 = arith.addf %99, %102 : vector<8x128xf32>
    %104 = arith.mulf %102, %102 : vector<8x128xf32>
    %105 = arith.addf %101, %104 : vector<8x128xf32>
    %106 = vector.extract_strided_slice %74 {offsets = [56, 0], sizes = [8, 128], strides = [1, 1]} : vector<128x128xf32> to vector<8x128xf32>
    %107 = arith.addf %103, %106 : vector<8x128xf32>
    %108 = arith.mulf %106, %106 : vector<8x128xf32>
    %109 = arith.addf %105, %108 : vector<8x128xf32>
    %110 = vector.extract_strided_slice %74 {offsets = [64, 0], sizes = [8, 128], strides = [1, 1]} : vector<128x128xf32> to vector<8x128xf32>
    %111 = arith.addf %107, %110 : vector<8x128xf32>
    %112 = arith.mulf %110, %110 : vector<8x128xf32>
    %113 = arith.addf %109, %112 : vector<8x128xf32>
    %114 = vector.extract_strided_slice %74 {offsets = [72, 0], sizes = [8, 128], strides = [1, 1]} : vector<128x128xf32> to vector<8x128xf32>
    %115 = arith.addf %111, %114 : vector<8x128xf32>
    %116 = arith.mulf %114, %114 : vector<8x128xf32>
    %117 = arith.addf %113, %116 : vector<8x128xf32>
    %118 = vector.extract_strided_slice %74 {offsets = [80, 0], sizes = [8, 128], strides = [1, 1]} : vector<128x128xf32> to vector<8x128xf32>
    %119 = arith.addf %115, %118 : vector<8x128xf32>
    %120 = arith.mulf %118, %118 : vector<8x128xf32>
    %121 = arith.addf %117, %120 : vector<8x128xf32>
    %122 = vector.extract_strided_slice %74 {offsets = [88, 0], sizes = [8, 128], strides = [1, 1]} : vector<128x128xf32> to vector<8x128xf32>
    %123 = arith.addf %119, %122 : vector<8x128xf32>
    %124 = arith.mulf %122, %122 : vector<8x128xf32>
    %125 = arith.addf %121, %124 : vector<8x128xf32>
    %126 = vector.extract_strided_slice %74 {offsets = [96, 0], sizes = [8, 128], strides = [1, 1]} : vector<128x128xf32> to vector<8x128xf32>
    %127 = arith.addf %123, %126 : vector<8x128xf32>
    %128 = arith.mulf %126, %126 : vector<8x128xf32>
    %129 = arith.addf %125, %128 : vector<8x128xf32>
    %130 = vector.extract_strided_slice %74 {offsets = [104, 0], sizes = [8, 128], strides = [1, 1]} : vector<128x128xf32> to vector<8x128xf32>
    %131 = arith.addf %127, %130 : vector<8x128xf32>
    %132 = arith.mulf %130, %130 : vector<8x128xf32>
    %133 = arith.addf %129, %132 : vector<8x128xf32>
    %134 = vector.extract_strided_slice %74 {offsets = [112, 0], sizes = [8, 128], strides = [1, 1]} : vector<128x128xf32> to vector<8x128xf32>
    %135 = arith.addf %131, %134 : vector<8x128xf32>
    %136 = arith.mulf %134, %134 : vector<8x128xf32>
    %137 = arith.addf %133, %136 : vector<8x128xf32>
    %138 = vector.extract_strided_slice %74 {offsets = [120, 0], sizes = [8, 128], strides = [1, 1]} : vector<128x128xf32> to vector<8x128xf32>
    %139 = arith.addf %135, %138 : vector<8x128xf32>
    %140 = arith.mulf %138, %138 : vector<8x128xf32>
    %141 = arith.addf %137, %140 : vector<8x128xf32>
    %c0_20 = arith.constant 0 : index
    %c0_21 = arith.constant 0 : index
    %142 = vector.load %arg9[%c0_20, %c0_21] : memref<8x128xf32, #tpu.memory_space<vmem>>, vector<8x128xf32>
    tpu.vector_store %arg9[%c0_20, %c0_21], %139 {strides = array<i32>} : memref<8x128xf32, #tpu.memory_space<vmem>>, vector<8x128xf32>,
    %c0_22 = arith.constant 0 : index
    %c0_23 = arith.constant 0 : index
    %143 = vector.load %arg10[%c0_22, %c0_23] : memref<8x128xf32, #tpu.memory_space<vmem>>, vector<8x128xf32>
    tpu.vector_store %arg10[%c0_22, %c0_23], %141 {strides = array<i32>} : memref<8x128xf32, #tpu.memory_space<vmem>>, vector<8x128xf32>,
    return
  }
  func.func @transform_0(%arg0: i32) -> (i32, i32) {
    %c0_i32 = arith.constant 0 : i32
    %c0_i32_0 = arith.constant 0 : i32
    return %arg0, %c0_i32 : i32, i32
  }
  func.func @transform_1(%arg0: i32) -> (i32, i32) {
    %c0_i32 = arith.constant 0 : i32
    %c0_i32_0 = arith.constant 0 : i32
    %c0_i32_1 = arith.constant 0 : i32
    return %c0_i32, %c0_i32_0 : i32, i32
  }
  func.func @transform_2(%arg0: i32) -> (i32, i32) {
    %c0_i32 = arith.constant 0 : i32
    %c0_i32_0 = arith.constant 0 : i32
    return %arg0, %c0_i32 : i32, i32
  }
  func.func @transform_3(%arg0: i32) -> (i32, i32) {
    %c0_i32 = arith.constant 0 : i32
    %c0_i32_0 = arith.constant 0 : i32
    %c0_i32_1 = arith.constant 0 : i32
    return %c0_i32, %c0_i32_0 : i32, i32
  }
  func.func @transform_4(%arg0: i32) -> (i32, i32) {
    %c0_i32 = arith.constant 0 : i32
    %c0_i32_0 = arith.constant 0 : i32
    return %arg0, %c0_i32 : i32, i32
  }
  func.func @transform_5(%arg0: i32) -> (i32, i32) {
    %c0_i32 = arith.constant 0 : i32
    %c0_i32_0 = arith.constant 0 : i32
    return %arg0, %c0_i32 : i32, i32
  }
  func.func @transform_6(%arg0: i32) -> (i32, i32) {
    %c0_i32 = arith.constant 0 : i32
    %c0_i32_0 = arith.constant 0 : i32
    return %arg0, %c0_i32 : i32, i32
  }
  func.func @transform_7(%arg0: i32) -> (i32, i32) {
    %c0_i32 = arith.constant 0 : i32
    %c0_i32_0 = arith.constant 0 : i32
    return %arg0, %c0_i32 : i32, i32
  }
  func.func @transform_8(%arg0: i32) -> (i32, i32) {
    %c0_i32 = arith.constant 0 : i32
    %c0_i32_0 = arith.constant 0 : i32
    return %arg0, %c0_i32 : i32, i32
  }
  func.func @transform_9(%arg0: i32) -> (i32, i32) {
    %c0_i32 = arith.constant 0 : i32
    %c0_i32_0 = arith.constant 0 : i32
    return %arg0, %c0_i32 : i32, i32
  }
}

module attributes {stable_mosaic.version = 11 : i64} {
  func.func @kernel(%arg0: i32, %arg1: memref<128x128xf32, #tpu.memory_space<vmem>>, %arg2: memref<128x128xf32, #tpu.memory_space<vmem>>, %arg3: memref<1x128xf32, #tpu.memory_space<vmem>>, %arg4: memref<1x128xf32, #tpu.memory_space<vmem>>, %arg5: memref<1x128xf32, #tpu.memory_space<vmem>>, %arg6: memref<1x128xf32, #tpu.memory_space<vmem>>, %arg7: memref<128x128xf32, #tpu.memory_space<vmem>>) attributes {dimension_semantics = [#tpu.dimension_semantics<parallel>], iteration_bounds = array<i64: 1>, scalar_prefetch = 0 : i64, scratch_operands = 0 : i64, tpu.core_type = #tpu.core_type<tc>, window_params = [{transform_indices = @transform_0, window_bounds = array<i64: 128, 128>}, {transform_indices = @transform_1, window_bounds = array<i64: 128, 128>}, {pipeline_mode = #tpu.pipeline_mode<synchronous>, transform_indices = @transform_2, window_bounds = array<i64: 1, 128>}, {pipeline_mode = #tpu.pipeline_mode<synchronous>, transform_indices = @transform_3, window_bounds = array<i64: 1, 128>}, {pipeline_mode = #tpu.pipeline_mode<synchronous>, transform_indices = @transform_4, window_bounds = array<i64: 1, 128>}, {pipeline_mode = #tpu.pipeline_mode<synchronous>, transform_indices = @transform_5, window_bounds = array<i64: 1, 128>}, {transform_indices = @transform_6, window_bounds = array<i64: 128, 128>}]} {
    %c0 = arith.constant 0 : index
    %c0_0 = arith.constant 0 : index
    %0 = vector.load %arg1[%c0, %c0_0] : memref<128x128xf32, #tpu.memory_space<vmem>>, vector<128x128xf32>
    %c0_1 = arith.constant 0 : index
    %c0_2 = arith.constant 0 : index
    %1 = vector.load %arg3[%c0_1, %c0_2] : memref<1x128xf32, #tpu.memory_space<vmem>>, vector<1x128xf32>
    %2 = vector.broadcast %1 : vector<1x128xf32> to vector<128x128xf32>
    %3 = arith.mulf %0, %2 : vector<128x128xf32>
    %c0_3 = arith.constant 0 : index
    %c0_4 = arith.constant 0 : index
    %4 = vector.load %arg4[%c0_3, %c0_4] : memref<1x128xf32, #tpu.memory_space<vmem>>, vector<1x128xf32>
    %5 = vector.broadcast %4 : vector<1x128xf32> to vector<128x128xf32>
    %6 = arith.addf %3, %5 : vector<128x128xf32>
    %c0_5 = arith.constant 0 : index
    %c0_6 = arith.constant 0 : index
    %7 = vector.load %arg2[%c0_5, %c0_6] : memref<128x128xf32, #tpu.memory_space<vmem>>, vector<128x128xf32>
    %c0_7 = arith.constant 0 : index
    %c0_8 = arith.constant 0 : index
    %8 = vector.load %arg5[%c0_7, %c0_8] : memref<1x128xf32, #tpu.memory_space<vmem>>, vector<1x128xf32>
    %9 = vector.broadcast %8 : vector<1x128xf32> to vector<128x128xf32>
    %10 = arith.mulf %7, %9 : vector<128x128xf32>
    %11 = arith.addf %6, %10 : vector<128x128xf32>
    %c0_9 = arith.constant 0 : index
    %c0_10 = arith.constant 0 : index
    %12 = vector.load %arg6[%c0_9, %c0_10] : memref<1x128xf32, #tpu.memory_space<vmem>>, vector<1x128xf32>
    %13 = vector.broadcast %12 : vector<1x128xf32> to vector<128x128xf32>
    %14 = arith.addf %11, %13 : vector<128x128xf32>
    %cst = arith.constant 0.000000e+00 : f32
    %15 = vector.broadcast %cst : f32 to vector<128x128xf32>
    %16 = arith.maximumf %14, %15 : vector<128x128xf32>
    %c0_11 = arith.constant 0 : index
    %c0_12 = arith.constant 0 : index
    %17 = vector.load %arg7[%c0_11, %c0_12] : memref<128x128xf32, #tpu.memory_space<vmem>>, vector<128x128xf32>
    tpu.vector_store %arg7[%c0_11, %c0_12], %16 {strides = array<i32>} : memref<128x128xf32, #tpu.memory_space<vmem>>, vector<128x128xf32>,
    return
  }
  func.func @transform_0(%arg0: i32) -> (i32, i32) {
    %c0_i32 = arith.constant 0 : i32
    %c0_i32_0 = arith.constant 0 : i32
    return %arg0, %c0_i32 : i32, i32
  }
  func.func @transform_1(%arg0: i32) -> (i32, i32) {
    %c0_i32 = arith.constant 0 : i32
    %c0_i32_0 = arith.constant 0 : i32
    return %arg0, %c0_i32 : i32, i32
  }
  func.func @transform_2(%arg0: i32) -> (i32, i32) {
    %c0_i32 = arith.constant 0 : i32
    %c0_i32_0 = arith.constant 0 : i32
    %c0_i32_1 = arith.constant 0 : i32
    return %c0_i32, %c0_i32_0 : i32, i32
  }
  func.func @transform_3(%arg0: i32) -> (i32, i32) {
    %c0_i32 = arith.constant 0 : i32
    %c0_i32_0 = arith.constant 0 : i32
    %c0_i32_1 = arith.constant 0 : i32
    return %c0_i32, %c0_i32_0 : i32, i32
  }
  func.func @transform_4(%arg0: i32) -> (i32, i32) {
    %c0_i32 = arith.constant 0 : i32
    %c0_i32_0 = arith.constant 0 : i32
    %c0_i32_1 = arith.constant 0 : i32
    return %c0_i32, %c0_i32_0 : i32, i32
  }
  func.func @transform_5(%arg0: i32) -> (i32, i32) {
    %c0_i32 = arith.constant 0 : i32
    %c0_i32_0 = arith.constant 0 : i32
    %c0_i32_1 = arith.constant 0 : i32
    return %c0_i32, %c0_i32_0 : i32, i32
  }
  func.func @transform_6(%arg0: i32) -> (i32, i32) {
    %c0_i32 = arith.constant 0 : i32
    %c0_i32_0 = arith.constant 0 : i32
    return %arg0, %c0_i32 : i32, i32
  }
}

</mosaic_0001>

<bundles_post_ra>
// kernel: resblock_forward.5
= control target key start
LH: loop header
LB: loop body
LE: loop exit
PB: predicated region body
PF: predicated region fallthrough
CT: control target
= control target key end

     0   :  { %s336_s0 = inlined_call_operand.vmem [shape: bf16[128,128], index: 0, kind: input, shape index: {}]   ;;  %s337_s1 = inlined_call_operand.vmem [shape: f32[1,128], index: 1, kind: input, shape index: {}]   ;;  %s338_s2 = inlined_call_operand.vmem [shape: f32[1,128], index: 2, kind: input, shape index: {}]   ;;  %s339_s3 = inlined_call_operand.vmem [shape: bf16[128,128], index: 3, kind: output, shape index: {}]  }
   0x1   :  { %v139_v0 = vld [vmem:[%s336_s0] sm:$0xff]   ;;  %v210_v5 = vld [vmem:[%s336_s0 + $0x8] sm:$0xff]   ;;  %v211_v8 = vld [vmem:[%s336_s0 + $0x10] sm:$0xff]  }
   0x2   :  { %v252_v1 = vld [vmem:[%s337_s1] ss:$0 sm:$0xff]  ;;  %v140_v2 = vunpack.c.l.bf16 %v139_v0  ;;  %v141_v3 = vunpack.c.h.bf16 %v139_v0  ;;  %v144_v6 = vunpack.c.l.bf16 %v210_v5  ;;  %v145_v7 = vunpack.c.h.bf16 %v210_v5  ;;  %v212_v9 = vld [vmem:[%s336_s0 + $0x18] sm:$0xff]   ;;  %v214_v35 = vld [vmem:[%s336_s0 + $0x28] sm:$0xff]  }
   0x3   :  { %v257_v4 = vld [vmem:[%s338_s2] ss:$0 sm:$0xff]  ;;  %v148_v12 = vunpack.c.l.bf16 %v211_v8  ;;  %v149_v13 = vunpack.c.h.bf16 %v211_v8  ;;  %v152_v16 = vunpack.c.l.bf16 %v212_v9  ;;  %v153_v17 = vunpack.c.h.bf16 %v212_v9  ;;  %v215_v40 = vld [vmem:[%s336_s0 + $0x30] sm:$0xff]   ;;  %v216_v45 = vld [vmem:[%s336_s0 + $0x38] sm:$0xff]  }
   0x4   :  { %v50_v10 = vmul.f32 %v252_v1, %v140_v2  ;;  %v51_v11 = vmul.f32 %v252_v1, %v141_v3  ;;  %v52_v14 = vmul.f32 %v252_v1, %v144_v6  ;;  %v53_v15 = vmul.f32 %v252_v1, %v145_v7  ;;  %v213_v26 = vld [vmem:[%s336_s0 + $0x20] sm:$0xff]  }
   0x5   :  { %v54_v20 = vmul.f32 %v252_v1, %v148_v12  ;;  %v55_v21 = vmul.f32 %v252_v1, %v149_v13  ;;  %v56_v24 = vmul.f32 %v252_v1, %v152_v16  ;;  %v57_v25 = vmul.f32 %v252_v1, %v153_v17 }
   0x6   :  { %v70_v18 = vadd.f32 %v257_v4, %v50_v10  ;;  %v71_v19 = vadd.f32 %v257_v4, %v51_v11  ;;  %v72_v22 = vadd.f32 %v257_v4, %v52_v14  ;;  %v73_v23 = vadd.f32 %v257_v4, %v53_v15 }
   0x7   :  { %v74_v29 = vadd.f32 %v257_v4, %v54_v20  ;;  %v75_v30 = vadd.f32 %v257_v4, %v55_v21  ;;  %v76_v33 = vadd.f32 %v257_v4, %v56_v24  ;;  %v77_v34 = vadd.f32 %v257_v4, %v57_v25 }
   0x8   :  { %v86_v27 = vmax.f32 %v70_v18, 0.0  ;;  %v87_v28 = vmax.f32 %v71_v19, 0.0  ;;  %v88_v31 = vmax.f32 %v72_v22, 0.0  ;;  %v89_v32 = vmax.f32 %v73_v23, 0.0 }
   0x9   :  { %v90_v37 = vmax.f32 %v74_v29, 0.0  ;;  %v91_v38 = vmax.f32 %v75_v30, 0.0  ;;  %v156_v39 = vunpack.c.l.bf16 %v213_v26  ;;  %v92_v42 = vmax.f32 %v76_v33, 0.0 }
   0xa   :  { %v173_v36 = vpack.c.bf16 %v87_v28, %v86_v27  ;;  %v178_v41 = vpack.c.bf16 %v89_v32, %v88_v31  ;;  %v93_v43 = vmax.f32 %v77_v34, 0.0  ;;  %v157_v44 = vunpack.c.h.bf16 %v213_v26 }
   0xb   :  { %v183_v46 = vpack.c.bf16 %v91_v38, %v90_v37  ;;  %v58_v47 = vmul.f32 %v252_v1, %v156_v39  ;;  %v160_v48 = vunpack.c.l.bf16 %v214_v35  ;;  %v161_v49 = vunpack.c.h.bf16 %v214_v35 }
   0xc   :  { %174 = vst [vmem:[%s339_s3] sm:$0xff] %v173_v36   ;;  %v188_v50 = vpack.c.bf16 %v93_v43, %v92_v42  ;;  %v59_v51 = vmul.f32 %v252_v1, %v157_v44  ;;  %v164_v52 = vunpack.c.l.bf16 %v215_v40  ;;  %v165_v53 = vunpack.c.h.bf16 %v215_v40 }
   0xd   :  { %217 = vst [vmem:[%s339_s3 + $0x8] sm:$0xff] %v178_v41   ;;  %v78_v54 = vadd.f32 %v257_v4, %v58_v47  ;;  %v60_v55 = vmul.f32 %v252_v1, %v160_v48  ;;  %v61_v56 = vmul.f32 %v252_v1, %v161_v49  ;;  %v168_v57 = vunpack.c.l.bf16 %v216_v45 }
   0xe   :  { %218 = vst [vmem:[%s339_s3 + $0x10] sm:$0xff] %v183_v46   ;;  %v79_v58 = vadd.f32 %v257_v4, %v59_v51  ;;  %v62_v59 = vmul.f32 %v252_v1, %v164_v52  ;;  %v63_v60 = vmul.f32 %v252_v1, %v165_v53  ;;  %v169_v61 = vunpack.c.h.bf16 %v216_v45 }
   0xf   :  { %219 = vst [vmem:[%s339_s3 + $0x18] sm:$0xff] %v188_v50   ;;  %v94_v62 = vmax.f32 %v78_v54, 0.0  ;;  %v80_v63 = vadd.f32 %v257_v4, %v60_v55  ;;  %v81_v0 = vadd.f32 %v257_v4, %v61_v56  ;;  %v64_v2 = vmul.f32 %v252_v1, %v168_v57 }
  0x10   :  { %v95_v3 = vmax.f32 %v79_v58, 0.0  ;;  %v82_v5 = vadd.f32 %v257_v4, %v62_v59  ;;  %v83_v6 = vadd.f32 %v257_v4, %v63_v60  ;;  %v65_v7 = vmul.f32 %v252_v1, %v169_v61 }
  0x11   :  { %v96_v8 = vmax.f32 %v80_v63, 0.0  ;;  %v97_v9 = vmax.f32 %v81_v0, 0.0  ;;  %v84_v10 = vadd.f32 %v257_v4, %v64_v2 }
  0x12   :  { %v193_v11 = vpack.c.bf16 %v95_v3, %v94_v62  ;;  %v98_v12 = vmax.f32 %v82_v5, 0.0  ;;  %v99_v13 = vmax.f32 %v83_v6, 0.0  ;;  %v85_v14 = vadd.f32 %v257_v4, %v65_v7 }
  0x13   :  { %v198_v15 = vpack.c.bf16 %v97_v9, %v96_v8  ;;  %v100_v16 = vmax.f32 %v84_v10, 0.0 }
  0x14   :  { %220 = vst [vmem:[%s339_s3 + $0x20] sm:$0xff] %v193_v11   ;;  %v203_v17 = vpack.c.bf16 %v99_v13, %v98_v12  ;;  %v101_v18 = vmax.f32 %v85_v14, 0.0 }
  0x15   :  { %221 = vst [vmem:[%s339_s3 + $0x28] sm:$0xff] %v198_v15  }
  0x16   :  { %222 = vst [vmem:[%s339_s3 + $0x30] sm:$0xff] %v203_v17   ;;  %v208_v1 = vpack.c.bf16 %v101_v18, %v100_v16 }
  0x18   :  { %223 = vst [vmem:[%s339_s3 + $0x38] sm:$0xff] %v208_v1  }

// kernel: resblock_forward.4
= control target key start
LH: loop header
LB: loop body
LE: loop exit
PB: predicated region body
PF: predicated region fallthrough
CT: control target
= control target key end

     0   :  { %s545_s1 = inlined_call_operand.vmem [shape: bf16[128,128], index: 1, kind: input, shape index: {}]   ;;  %s546_s0 = inlined_call_operand.vmem [shape: bf16[128,128], index: 0, kind: input, shape index: {}]   ;;  %s547_s2 = inlined_call_operand.vmem [shape: bf16[128,128], index: 2, kind: output, shape index: {0}]   ;;  %s548_s3 = inlined_call_operand.vmem [shape: f32[8,128], index: 3, kind: output, shape index: {1}]   ;;  %s549_s4 = inlined_call_operand.vmem [shape: f32[8,128], index: 4, kind: output, shape index: {2}]  }
   0x1   :  { %v364_v0 = vld [vmem:[%s545_s1 + $0x38] sm:$0xff]  ;;  %v363_v1 = vld [vmem:[%s545_s1 + $0x30] sm:$0xff]  ;;  %v362_v2 = vld [vmem:[%s545_s1 + $0x28] sm:$0xff] }
   0x2   :  { %142 = vmatpush.bf16.msra.mxu0 %v364_v0  ;;  %412 = vmatpush.bf16.msra.mxu1 %v364_v0  ;;  %v361_v3 = vld [vmem:[%s545_s1 + $0x20] sm:$0xff]  ;;  %v360_v4 = vld [vmem:[%s545_s1 + $0x18] sm:$0xff]  ;;  %v359_v5 = vld [vmem:[%s545_s1 + $0x10] sm:$0xff] }
   0x3   :  { %413 = vmatpush.bf16.msra.mxu2 %v364_v0  ;;  %414 = vmatpush.bf16.msra.mxu3 %v364_v0  ;;  %v358_v6 = vld [vmem:[%s545_s1 + $0x8] sm:$0xff]  ;;  %v357_v7 = vld [vmem:[%s545_s1] sm:$0xff]  ;;  %v351_v9 = vld [vmem:[%s546_s0 + $0x10] sm:$0xff] }
   0x4   :  { %v349_v8 = vld [vmem:[%s546_s0] sm:$0xff]  ;;  %v355_v11 = vld [vmem:[%s546_s0 + $0x30] sm:$0xff]  ;;  %v350_v12 = vld [vmem:[%s546_s0 + $0x8] sm:$0xff] }
   0x5   :  { %v353_v10 = vld [vmem:[%s546_s0 + $0x20] sm:$0xff]  ;;  %v352_v13 = vld [vmem:[%s546_s0 + $0x18] sm:$0xff]  ;;  %v354_v14 = vld [vmem:[%s546_s0 + $0x28] sm:$0xff] }
   0x6   :  { %143 = vmatpush.bf16.msra.mxu0 %v363_v1  ;;  %415 = vmatpush.bf16.msra.mxu1 %v363_v1  ;;  %v356_v15 = vld [vmem:[%s546_s0 + $0x38] sm:$0xff] }
   0x7   :  { %416 = vmatpush.bf16.msra.mxu2 %v363_v1  ;;  %417 = vmatpush.bf16.msra.mxu3 %v363_v1 }
   0xa   :  { %144 = vmatpush.bf16.msra.mxu0 %v362_v2  ;;  %418 = vmatpush.bf16.msra.mxu1 %v362_v2 }
   0xb   :  { %419 = vmatpush.bf16.msra.mxu2 %v362_v2  ;;  %420 = vmatpush.bf16.msra.mxu3 %v362_v2 }
   0xe   :  { %145 = vmatpush.bf16.msra.mxu0 %v361_v3  ;;  %421 = vmatpush.bf16.msra.mxu1 %v361_v3 }
   0xf   :  { %422 = vmatpush.bf16.msra.mxu2 %v361_v3  ;;  %423 = vmatpush.bf16.msra.mxu3 %v361_v3 }
  0x12   :  { %146 = vmatpush.bf16.msra.mxu0 %v360_v4  ;;  %424 = vmatpush.bf16.msra.mxu1 %v360_v4 }
  0x13   :  { %425 = vmatpush.bf16.msra.mxu2 %v360_v4  ;;  %426 = vmatpush.bf16.msra.mxu3 %v360_v4 }
  0x16   :  { %147 = vmatpush.bf16.msra.mxu0 %v359_v5  ;;  %427 = vmatpush.bf16.msra.mxu1 %v359_v5 }
  0x17   :  { %428 = vmatpush.bf16.msra.mxu2 %v359_v5  ;;  %429 = vmatpush.bf16.msra.mxu3 %v359_v5 }
  0x1a   :  { %148 = vmatpush.bf16.msra.mxu0 %v358_v6  ;;  %430 = vmatpush.bf16.msra.mxu1 %v358_v6 }
  0x1b   :  { %431 = vmatpush.bf16.msra.mxu2 %v358_v6  ;;  %432 = vmatpush.bf16.msra.mxu3 %v358_v6 }
  0x1e   :  { %149 = vmatpush.bf16.msra.mxu0 %v357_v7  ;;  %433 = vmatpush.bf16.msra.mxu1 %v357_v7 }
  0x1f   :  { %434 = vmatpush.bf16.msra.mxu2 %v357_v7  ;;  %435 = vmatpush.bf16.msra.mxu3 %v357_v7 }
  0x21   :  { %150 = vmatmul.bf16.vlgmr.msra.gmra.mxu0 %v349_v8  ;;  %160 = vmatmul.bf16.vlgmr.msra.gmra.mxu1 %v351_v9 }
  0x22   :  { %170 = vmatmul.bf16.vlgmr.msra.gmra.mxu2 %v353_v10  ;;  %180 = vmatmul.bf16.vlgmr.msra.gmra.mxu3 %v355_v11 }
  0x31   :  { %155 = vmatmul.bf16.gmra.mxu0 %v350_v12  ;;  %165 = vmatmul.bf16.gmra.mxu1 %v352_v13 }
  0x32   :  { %175 = vmatmul.bf16.gmra.mxu2 %v354_v14  ;;  %185 = vmatmul.bf16.gmra.mxu3 %v356_v15 }
  0x9e   :  { %v151_v16 = vpop.f32.mrf.mxu0  ;;  %v161_v17 = vpop.f32.mrf.mxu1 }
  0x9f   :  { %v224_v31 = vmul.f32 %v151_v16, %v151_v16  ;;  %v236_v45 = vmul.f32 %v161_v17, %v161_v17 }
  0xa5   :  { %v171_v18 = vpop.f32.mrf.mxu2  ;;  %v509_v19 = vpop.f32.mrf.mxu3 }
  0xa6   :  { %v153_v20 = vpop.f32.mrf.mxu0  ;;  %v163_v21 = vpop.f32.mrf.mxu1  ;;  %v248_v61 = vmul.f32 %v171_v18, %v171_v18  ;;  %v260_v9 = vmul.f32 %v509_v19, %v509_v19 }
  0xa7   :  { %v368_v22 = vpack.c.bf16 %v153_v20, %v151_v16  ;;  %v378_v23 = vpack.c.bf16 %v163_v21, %v161_v17  ;;  %v227_v30 = vmul.f32 %v153_v20, %v153_v20  ;;  %v226_v33 = vadd.f32 %v153_v20, %v151_v16 }
  0xa8   :  { %v239_v48 = vmul.f32 %v163_v21, %v163_v21 }
  0xa9   :  { %369 = vst [vmem:[%s547_s2] sm:$0xff] %v368_v22   ;;  %v228_v34 = vadd.f32 %v227_v30, %v224_v31 }
  0xaa   :  { %406 = vst [vmem:[%s547_s2 + $0x10] sm:$0xff] %v378_v23  }
  0xad   :  { %v173_v24 = vpop.f32.mrf.mxu2  ;;  %v183_v25 = vpop.f32.mrf.mxu3 }
  0xae   :  { %v156_v26 = vpop.f32.mrf.mxu0  ;;  %v166_v27 = vpop.f32.mrf.mxu1  ;;  %v388_v28 = vpack.c.bf16 %v173_v24, %v171_v18  ;;  %v398_v29 = vpack.c.bf16 %v183_v25, %v509_v19  ;;  %v251_v0 = vmul.f32 %v173_v24, %v173_v24  ;;  %v263_v12 = vmul.f32 %v183_v25, %v183_v25 }
  0xaf   :  { %v230_v32 = vmul.f32 %v156_v26, %v156_v26  ;;  %v229_v35 = vadd.f32 %v226_v33, %v156_v26  ;;  %v242_v51 = vmul.f32 %v166_v27, %v166_v27 }
  0xb0   :  { %408 = vst [vmem:[%s547_s2 + $0x20] sm:$0xff] %v388_v28  }
  0xb1   :  { %410 = vst [vmem:[%s547_s2 + $0x30] sm:$0xff] %v398_v29   ;;  %v231_v38 = vadd.f32 %v230_v32, %v228_v34 }
  0xb5   :  { %v176_v36 = vpop.f32.mrf.mxu2  ;;  %v186_v37 = vpop.f32.mrf.mxu3 }
  0xb6   :  { %v158_v39 = vpop.f32.mrf.mxu0  ;;  %v168_v40 = vpop.f32.mrf.mxu1  ;;  %v254_v5 = vmul.f32 %v176_v36, %v176_v36 }
  0xb7   :  { %v373_v41 = vpack.c.bf16 %v158_v39, %v156_v26  ;;  %v232_v42 = vadd.f32 %v229_v35, %v158_v39  ;;  %v233_v43 = vmul.f32 %v158_v39, %v158_v39  ;;  %v383_v44 = vpack.c.bf16 %v168_v40, %v166_v27 }
  0xb8   :  { %v245_v60 = vmul.f32 %v168_v40, %v168_v40 }
  0xb9   :  { %405 = vst [vmem:[%s547_s2 + $0x8] sm:$0xff] %v373_v41   ;;  %v234_v46 = vadd.f32 %v233_v43, %v231_v38  ;;  %v235_v47 = vadd.f32 %v232_v42, %v161_v17  ;;  %v266_v17 = vmul.f32 %v186_v37, %v186_v37 }
  0xba   :  { %407 = vst [vmem:[%s547_s2 + $0x18] sm:$0xff] %v383_v44  }
  0xbb   :  { %v237_v49 = vadd.f32 %v236_v45, %v234_v46  ;;  %v238_v50 = vadd.f32 %v235_v47, %v163_v21 }
  0xbd   :  { %v240_v52 = vadd.f32 %v239_v48, %v237_v49  ;;  %v241_v53 = vadd.f32 %v238_v50, %v166_v27  ;;  %v178_v54 = vpop.f32.mrf.mxu2  ;;  %v188_v55 = vpop.f32.mrf.mxu3 }
  0xbe   :  { %v393_v56 = vpack.c.bf16 %v178_v54, %v176_v36  ;;  %v403_v57 = vpack.c.bf16 %v188_v55, %v186_v37  ;;  %v257_v8 = vmul.f32 %v178_v54, %v178_v54  ;;  %v269_v21 = vmul.f32 %v188_v55, %v188_v55 }
  0xbf   :  { %v243_v58 = vadd.f32 %v242_v51, %v240_v52  ;;  %v244_v59 = vadd.f32 %v241_v53, %v168_v40 }
  0xc0   :  { %409 = vst [vmem:[%s547_s2 + $0x28] sm:$0xff] %v393_v56  }
  0xc1   :  { %v246_v62 = vadd.f32 %v245_v60, %v243_v58  ;;  %v247_v63 = vadd.f32 %v244_v59, %v171_v18  ;;  %411 = vst [vmem:[%s547_s2 + $0x38] sm:$0xff] %v403_v57  }
  0xc3   :  { %v249_v1 = vadd.f32 %v248_v61, %v246_v62  ;;  %v250_v2 = vadd.f32 %v247_v63, %v173_v24 }
  0xc5   :  { %v252_v3 = vadd.f32 %v251_v0, %v249_v1  ;;  %v253_v4 = vadd.f32 %v250_v2, %v176_v36 }
  0xc7   :  { %v255_v6 = vadd.f32 %v254_v5, %v252_v3  ;;  %v256_v7 = vadd.f32 %v253_v4, %v178_v54 }
  0xc9   :  { %v258_v10 = vadd.f32 %v257_v8, %v255_v6  ;;  %v259_v11 = vadd.f32 %v256_v7, %v509_v19 }
  0xcb   :  { %v261_v13 = vadd.f32 %v260_v9, %v258_v10  ;;  %v262_v14 = vadd.f32 %v259_v11, %v183_v25 }
  0xcd   :  { %v264_v15 = vadd.f32 %v263_v12, %v261_v13  ;;  %v265_v16 = vadd.f32 %v262_v14, %v186_v37 }
  0xcf   :  { %v267_v18 = vadd.f32 %v266_v17, %v264_v15  ;;  %v268_v20 = vadd.f32 %v265_v16, %v188_v55 }
  0xd1   :  { %v270_v22 = vadd.f32 %v269_v21, %v267_v18  ;;  %271 = vst [vmem:[%s548_s3] sm:$0xff] %v268_v20 }
  0xd3   :  { %272 = vst [vmem:[%s549_s4] sm:$0xff] %v270_v22 }

// kernel: resblock_forward.7
= control target key start
LH: loop header
LB: loop body
LE: loop exit
PB: predicated region body
PF: predicated region fallthrough
CT: control target
= control target key end

     0   :  { %s454_s0 = inlined_call_operand.vmem [shape: f32[128,128], index: 0, kind: input, shape index: {}]   ;;  %s455_s1 = inlined_call_operand.vmem [shape: f32[128,128], index: 1, kind: input, shape index: {}]   ;;  %s456_s2 = inlined_call_operand.vmem [shape: f32[1,128], index: 2, kind: input, shape index: {}]   ;;  %s457_s3 = inlined_call_operand.vmem [shape: f32[1,128], index: 3, kind: input, shape index: {}]   ;;  %s458_s4 = inlined_call_operand.vmem [shape: f32[1,128], index: 4, kind: input, shape index: {}]   ;;  %s459_s5 = inlined_call_operand.vmem [shape: f32[1,128], index: 5, kind: input, shape index: {}]   ;;  %s460_s6 = inlined_call_operand.vmem [shape: f32[128,128], index: 6, kind: output, shape index: {}]  }
   0x1   :  { %v23_v0 = vld [vmem:[%s454_s0] sm:$0xff]  ;;  %v24_v7 = vld [vmem:[%s454_s0 + $0x8] sm:$0xff]  ;;  %v25_v13 = vld [vmem:[%s454_s0 + $0x10] sm:$0xff] }
   0x2   :  { %v232_v1 = vld [vmem:[%s456_s2] ss:$0 sm:$0xff]  ;;  %v80_v8 = vld [vmem:[%s455_s1 + $0x8] sm:$0xff]  ;;  %v81_v14 = vld [vmem:[%s455_s1 + $0x10] sm:$0xff] }
   0x3   :  { %v237_v2 = vld [vmem:[%s457_s3] ss:$0 sm:$0xff]  ;;  %v43_v4 = vmul.f32 %v232_v1, %v23_v0  ;;  %v44_v11 = vmul.f32 %v232_v1, %v24_v7  ;;  %v26_v15 = vld [vmem:[%s454_s0 + $0x18] sm:$0xff]  ;;  %v45_v16 = vmul.f32 %v232_v1, %v25_v13  ;;  %v28_v26 = vld [vmem:[%s454_s0 + $0x28] sm:$0xff] }
   0x4   :  { %v79_v3 = vld [vmem:[%s455_s1] sm:$0xff]  ;;  %v46_v18 = vmul.f32 %v232_v1, %v26_v15  ;;  %v82_v19 = vld [vmem:[%s455_s1 + $0x18] sm:$0xff]  ;;  %v84_v27 = vld [vmem:[%s455_s1 + $0x28] sm:$0xff]  ;;  %v48_v32 = vmul.f32 %v232_v1, %v28_v26 }
   0x5   :  { %v246_v5 = vld [vmem:[%s458_s4] ss:$0 sm:$0xff]  ;;  %v63_v9 = vadd.f32 %v237_v2, %v43_v4  ;;  %v64_v23 = vadd.f32 %v237_v2, %v44_v11  ;;  %v29_v28 = vld [vmem:[%s454_s0 + $0x30] sm:$0xff]  ;;  %v65_v29 = vadd.f32 %v237_v2, %v45_v16  ;;  %v30_v42 = vld [vmem:[%s454_s0 + $0x38] sm:$0xff] }
   0x6   :  { %v251_v6 = vld [vmem:[%s459_s5] ss:$0 sm:$0xff]  ;;  %v99_v10 = vmul.f32 %v246_v5, %v79_v3  ;;  %v100_v12 = vmul.f32 %v246_v5, %v80_v8  ;;  %v101_v17 = vmul.f32 %v246_v5, %v81_v14  ;;  %v102_v24 = vmul.f32 %v246_v5, %v82_v19  ;;  %v85_v33 = vld [vmem:[%s455_s1 + $0x30] sm:$0xff]  ;;  %v86_v43 = vld [vmem:[%s455_s1 + $0x38] sm:$0xff] }
   0x7   :  { %v27_v20 = vld [vmem:[%s454_s0 + $0x20] sm:$0xff]  ;;  %v66_v30 = vadd.f32 %v237_v2, %v46_v18  ;;  %v104_v37 = vmul.f32 %v246_v5, %v84_v27  ;;  %v68_v40 = vadd.f32 %v237_v2, %v48_v32  ;;  %v49_v41 = vmul.f32 %v232_v1, %v29_v28  ;;  %v32_v58 = vld [vmem:[%s454_s0 + $0x48] sm:$0xff]  ;;  %v33_v0 = vld [vmem:[%s454_s0 + $0x50] sm:$0xff] }
   0x8   :  { %v83_v21 = vld [vmem:[%s455_s1 + $0x20] sm:$0xff]  ;;  %v115_v22 = vadd.f32 %v99_v10, %v63_v9  ;;  %v47_v25 = vmul.f32 %v232_v1, %v27_v20  ;;  %v116_v35 = vadd.f32 %v100_v12, %v64_v23  ;;  %v117_v38 = vadd.f32 %v101_v17, %v65_v29  ;;  %v88_v59 = vld [vmem:[%s455_s1 + $0x48] sm:$0xff]  ;;  %v89_v3 = vld [vmem:[%s455_s1 + $0x50] sm:$0xff] }
   0x9   :  { %v103_v31 = vmul.f32 %v246_v5, %v83_v21  ;;  %v118_v39 = vadd.f32 %v102_v24, %v66_v30  ;;  %v105_v47 = vmul.f32 %v246_v5, %v85_v33  ;;  %v120_v50 = vadd.f32 %v104_v37, %v68_v40  ;;  %v31_v52 = vld [vmem:[%s454_s0 + $0x40] sm:$0xff]  ;;  %v34_v10 = vld [vmem:[%s454_s0 + $0x58] sm:$0xff] }
   0xa   :  { %v135_v34 = vadd.f32 %v251_v6, %v115_v22  ;;  %v67_v36 = vadd.f32 %v237_v2, %v47_v25  ;;  %v136_v45 = vadd.f32 %v251_v6, %v116_v35  ;;  %v137_v48 = vadd.f32 %v251_v6, %v117_v38  ;;  %v87_v53 = vld [vmem:[%s455_s1 + $0x40] sm:$0xff]  ;;  %v90_v11 = vld [vmem:[%s455_s1 + $0x58] sm:$0xff]  ;;  %v36_v22 = vld [vmem:[%s454_s0 + $0x68] sm:$0xff] }
   0xb   :  { %v138_v49 = vadd.f32 %v251_v6, %v118_v39  ;;  %v69_v51 = vadd.f32 %v237_v2, %v49_v41  ;;  %v50_v56 = vmul.f32 %v232_v1, %v30_v42  ;;  %v106_v57 = vmul.f32 %v246_v5, %v86_v43  ;;  %v35_v16 = vld [vmem:[%s454_s0 + $0x60] sm:$0xff]  ;;  %v93_v41 = vld [vmem:[%s455_s1 + $0x70] sm:$0xff] }
   0xc   :  { %v151_v44 = vmax.f32 %v135_v34, 0.0  ;;  %v119_v46 = vadd.f32 %v103_v31, %v67_v36  ;;  %v152_v54 = vmax.f32 %v136_v45, 0.0  ;;  %v153_v60 = vmax.f32 %v137_v48, 0.0  ;;  %v91_v21 = vld [vmem:[%s455_s1 + $0x60] sm:$0xff]  ;;  %v92_v31 = vld [vmem:[%s455_s1 + $0x68] sm:$0xff]  ;;  %v37_v36 = vld [vmem:[%s454_s0 + $0x70] sm:$0xff] }
   0xd   :  { %v154_v61 = vmax.f32 %v138_v49, 0.0  ;;  %v140_v62 = vadd.f32 %v251_v6, %v120_v50  ;;  %v121_v63 = vadd.f32 %v105_v47, %v69_v51  ;;  %v70_v7 = vadd.f32 %v237_v2, %v50_v56  ;;  %v94_v51 = vld [vmem:[%s455_s1 + $0x78] sm:$0xff] }
   0xe   :  { %167 = vst [vmem:[%s460_s6] sm:$0xff] %v151_v44  ;;  %v139_v55 = vadd.f32 %v251_v6, %v119_v46  ;;  %v51_v8 = vmul.f32 %v232_v1, %v31_v52  ;;  %v107_v9 = vmul.f32 %v246_v5, %v87_v53  ;;  %v52_v14 = vmul.f32 %v232_v1, %v32_v58  ;;  %v38_v46 = vld [vmem:[%s454_s0 + $0x78] sm:$0xff] }
   0xf   :  { %168 = vst [vmem:[%s460_s6 + $0x8] sm:$0xff] %v152_v54  ;;  %v156_v12 = vmax.f32 %v140_v62, 0.0  ;;  %v141_v13 = vadd.f32 %v251_v6, %v121_v63  ;;  %v108_v15 = vmul.f32 %v246_v5, %v88_v59  ;;  %v122_v17 = vadd.f32 %v106_v57, %v70_v7 }
  0x10   :  { %v155_v4 = vmax.f32 %v139_v55, 0.0  ;;  %169 = vst [vmem:[%s460_s6 + $0x10] sm:$0xff] %v153_v60  ;;  %v71_v18 = vadd.f32 %v237_v2, %v51_v8  ;;  %v53_v19 = vmul.f32 %v232_v1, %v33_v0  ;;  %v109_v20 = vmul.f32 %v246_v5, %v89_v3 }
  0x11   :  { %170 = vst [vmem:[%s460_s6 + $0x18] sm:$0xff] %v154_v61  ;;  %v157_v23 = vmax.f32 %v141_v13, 0.0  ;;  %v72_v24 = vadd.f32 %v237_v2, %v52_v14  ;;  %v54_v25 = vmul.f32 %v232_v1, %v34_v10  ;;  %v110_v26 = vmul.f32 %v246_v5, %v90_v11 }
  0x12   :  { %171 = vst [vmem:[%s460_s6 + $0x20] sm:$0xff] %v155_v4  ;;  %v142_v27 = vadd.f32 %v251_v6, %v122_v17  ;;  %v123_v28 = vadd.f32 %v107_v9, %v71_v18  ;;  %v73_v29 = vadd.f32 %v237_v2, %v53_v19  ;;  %v55_v30 = vmul.f32 %v232_v1, %v35_v16 }
  0x13   :  { %172 = vst [vmem:[%s460_s6 + $0x28] sm:$0xff] %v156_v12  ;;  %v124_v32 = vadd.f32 %v108_v15, %v72_v24  ;;  %v74_v33 = vadd.f32 %v237_v2, %v54_v25  ;;  %v111_v34 = vmul.f32 %v246_v5, %v91_v21  ;;  %v56_v35 = vmul.f32 %v232_v1, %v36_v22 }
  0x14   :  { %173 = vst [vmem:[%s460_s6 + $0x30] sm:$0xff] %v157_v23  ;;  %v158_v37 = vmax.f32 %v142_v27, 0.0  ;;  %v143_v38 = vadd.f32 %v251_v6, %v123_v28  ;;  %v125_v39 = vadd.f32 %v109_v20, %v73_v29  ;;  %v75_v40 = vadd.f32 %v237_v2, %v55_v30 }
  0x15   :  { %v144_v42 = vadd.f32 %v251_v6, %v124_v32  ;;  %v126_v43 = vadd.f32 %v110_v26, %v74_v33  ;;  %v76_v44 = vadd.f32 %v237_v2, %v56_v35  ;;  %v112_v45 = vmul.f32 %v246_v5, %v92_v31 }
  0x16   :  { %174 = vst [vmem:[%s460_s6 + $0x38] sm:$0xff] %v158_v37  ;;  %v159_v47 = vmax.f32 %v143_v38, 0.0  ;;  %v145_v48 = vadd.f32 %v251_v6, %v125_v39  ;;  %v127_v49 = vadd.f32 %v111_v34, %v75_v40  ;;  %v57_v50 = vmul.f32 %v232_v1, %v37_v36 }
  0x17   :  { %v160_v52 = vmax.f32 %v144_v42, 0.0  ;;  %v146_v53 = vadd.f32 %v251_v6, %v126_v43  ;;  %v128_v54 = vadd.f32 %v112_v45, %v76_v44  ;;  %v113_v55 = vmul.f32 %v246_v5, %v93_v41 }
  0x18   :  { %175 = vst [vmem:[%s460_s6 + $0x40] sm:$0xff] %v159_v47  ;;  %v161_v56 = vmax.f32 %v145_v48, 0.0  ;;  %v147_v57 = vadd.f32 %v251_v6, %v127_v49  ;;  %v77_v58 = vadd.f32 %v237_v2, %v57_v50  ;;  %v58_v59 = vmul.f32 %v232_v1, %v38_v46 }
  0x19   :  { %176 = vst [vmem:[%s460_s6 + $0x48] sm:$0xff] %v160_v52  ;;  %v162_v60 = vmax.f32 %v146_v53, 0.0  ;;  %v148_v61 = vadd.f32 %v251_v6, %v128_v54  ;;  %v114_v62 = vmul.f32 %v246_v5, %v94_v51 }
  0x1a   :  { %177 = vst [vmem:[%s460_s6 + $0x50] sm:$0xff] %v161_v56  ;;  %v163_v63 = vmax.f32 %v147_v57, 0.0  ;;  %v129_v0 = vadd.f32 %v113_v55, %v77_v58  ;;  %v78_v3 = vadd.f32 %v237_v2, %v58_v59 }
  0x1b   :  { %178 = vst [vmem:[%s460_s6 + $0x58] sm:$0xff] %v162_v60  ;;  %v164_v1 = vmax.f32 %v148_v61, 0.0 }
  0x1c   :  { %179 = vst [vmem:[%s460_s6 + $0x60] sm:$0xff] %v163_v63  ;;  %v149_v4 = vadd.f32 %v251_v6, %v129_v0  ;;  %v130_v5 = vadd.f32 %v114_v62, %v78_v3 }
  0x1d   :  { %180 = vst [vmem:[%s460_s6 + $0x68] sm:$0xff] %v164_v1 }
  0x1e   :  { %v165_v7 = vmax.f32 %v149_v4, 0.0  ;;  %v150_v8 = vadd.f32 %v251_v6, %v130_v5 }
  0x20   :  { %181 = vst [vmem:[%s460_s6 + $0x70] sm:$0xff] %v165_v7  ;;  %v166_v2 = vmax.f32 %v150_v8, 0.0 }
  0x22   :  { %182 = vst [vmem:[%s460_s6 + $0x78] sm:$0xff] %v166_v2 }

// kernel: resblock_forward.6
= control target key start
LH: loop header
LB: loop body
LE: loop exit
PB: predicated region body
PF: predicated region fallthrough
CT: control target
= control target key end

     0   :  { %s1035_s1 = inlined_call_operand.vmem [shape: bf16[128,128], index: 1, kind: input, shape index: {}]   ;;  %s1036_s3 = inlined_call_operand.vmem [shape: bf16[128,128], index: 3, kind: input, shape index: {}]   ;;  %s1037_s0 = inlined_call_operand.vmem [shape: bf16[128,128], index: 0, kind: input, shape index: {}]   ;;  %s1038_s2 = inlined_call_operand.vmem [shape: bf16[128,128], index: 2, kind: input, shape index: {}]   ;;  %s1039_s4 = inlined_call_operand.vmem [shape: f32[128,128], index: 4, kind: output, shape index: {0}]   ;;  %s1040_s5 = inlined_call_operand.vmem [shape: f32[128,128], index: 5, kind: output, shape index: {1}]   ;;  %s1041_s6 = inlined_call_operand.vmem [shape: f32[8,128], index: 6, kind: output, shape index: {2}]   ;;  %s1042_s8 = inlined_call_operand.vmem [shape: f32[8,128], index: 8, kind: output, shape index: {4}]   ;;  %s1043_s7 = inlined_call_operand.vmem [shape: f32[8,128], index: 7, kind: output, shape index: {3}]   ;;  %s1044_s9 = inlined_call_operand.vmem [shape: f32[8,128], index: 9, kind: output, shape index: {5}]  }
   0x1   :  { %v676_v0 = vld [vmem:[%s1035_s1 + $0x38] sm:$0xff]  ;;  %v675_v2 = vld [vmem:[%s1035_s1 + $0x30] sm:$0xff]  ;;  %v674_v4 = vld [vmem:[%s1035_s1 + $0x28] sm:$0xff] }
   0x2   :  { %v692_v1 = vld [vmem:[%s1036_s3 + $0x38] sm:$0xff]  ;;  %151 = vmatpush.bf16.msra.mxu0 %v676_v0  ;;  %v691_v3 = vld [vmem:[%s1036_s3 + $0x30] sm:$0xff]  ;;  %693 = vmatpush.bf16.msra.mxu2 %v676_v0  ;;  %v690_v5 = vld [vmem:[%s1036_s3 + $0x28] sm:$0xff] }
   0x3   :  { %394 = vmatpush.bf16.msra.mxu1 %v692_v1  ;;  %701 = vmatpush.bf16.msra.mxu3 %v692_v1  ;;  %v673_v6 = vld [vmem:[%s1035_s1 + $0x20] sm:$0xff]  ;;  %v672_v8 = vld [vmem:[%s1035_s1 + $0x18] sm:$0xff]  ;;  %v671_v10 = vld [vmem:[%s1035_s1 + $0x10] sm:$0xff] }
   0x4   :  { %v689_v7 = vld [vmem:[%s1036_s3 + $0x20] sm:$0xff]  ;;  %v688_v9 = vld [vmem:[%s1036_s3 + $0x18] sm:$0xff]  ;;  %v687_v11 = vld [vmem:[%s1036_s3 + $0x10] sm:$0xff] }
   0x5   :  { %v670_v12 = vld [vmem:[%s1035_s1 + $0x8] sm:$0xff]  ;;  %v669_v14 = vld [vmem:[%s1035_s1] sm:$0xff]  ;;  %v663_v24 = vld [vmem:[%s1037_s0 + $0x10] sm:$0xff] }
   0x6   :  { %152 = vmatpush.bf16.msra.mxu0 %v675_v2  ;;  %694 = vmatpush.bf16.msra.mxu2 %v675_v2  ;;  %v686_v13 = vld [vmem:[%s1036_s3 + $0x8] sm:$0xff]  ;;  %v685_v15 = vld [vmem:[%s1036_s3] sm:$0xff]  ;;  %v679_v25 = vld [vmem:[%s1038_s2 + $0x10] sm:$0xff] }
   0x7   :  { %395 = vmatpush.bf16.msra.mxu1 %v691_v3  ;;  %702 = vmatpush.bf16.msra.mxu3 %v691_v3  ;;  %v661_v16 = vld [vmem:[%s1037_s0] sm:$0xff]  ;;  %v662_v20 = vld [vmem:[%s1037_s0 + $0x8] sm:$0xff]  ;;  %v667_v26 = vld [vmem:[%s1037_s0 + $0x30] sm:$0xff] }
   0x8   :  { %v677_v17 = vld [vmem:[%s1038_s2] sm:$0xff]  ;;  %v678_v21 = vld [vmem:[%s1038_s2 + $0x8] sm:$0xff]  ;;  %v683_v27 = vld [vmem:[%s1038_s2 + $0x30] sm:$0xff] }
   0x9   :  { %v665_v18 = vld [vmem:[%s1037_s0 + $0x20] sm:$0xff]  ;;  %v666_v22 = vld [vmem:[%s1037_s0 + $0x28] sm:$0xff]  ;;  %v664_v28 = vld [vmem:[%s1037_s0 + $0x18] sm:$0xff] }
   0xa   :  { %153 = vmatpush.bf16.msra.mxu0 %v674_v4  ;;  %695 = vmatpush.bf16.msra.mxu2 %v674_v4  ;;  %v681_v19 = vld [vmem:[%s1038_s2 + $0x20] sm:$0xff]  ;;  %v682_v23 = vld [vmem:[%s1038_s2 + $0x28] sm:$0xff]  ;;  %v680_v29 = vld [vmem:[%s1038_s2 + $0x18] sm:$0xff] }
   0xb   :  { %396 = vmatpush.bf16.msra.mxu1 %v690_v5  ;;  %703 = vmatpush.bf16.msra.mxu3 %v690_v5  ;;  %v668_v30 = vld [vmem:[%s1037_s0 + $0x38] sm:$0xff] }
   0xc   :  { %v684_v31 = vld [vmem:[%s1038_s2 + $0x38] sm:$0xff] }
   0xe   :  { %154 = vmatpush.bf16.msra.mxu0 %v673_v6  ;;  %696 = vmatpush.bf16.msra.mxu2 %v673_v6 }
   0xf   :  { %397 = vmatpush.bf16.msra.mxu1 %v689_v7  ;;  %704 = vmatpush.bf16.msra.mxu3 %v689_v7 }
  0x12   :  { %155 = vmatpush.bf16.msra.mxu0 %v672_v8  ;;  %697 = vmatpush.bf16.msra.mxu2 %v672_v8 }
  0x13   :  { %398 = vmatpush.bf16.msra.mxu1 %v688_v9  ;;  %705 = vmatpush.bf16.msra.mxu3 %v688_v9 }
  0x16   :  { %156 = vmatpush.bf16.msra.mxu0 %v671_v10  ;;  %698 = vmatpush.bf16.msra.mxu2 %v671_v10 }
  0x17   :  { %399 = vmatpush.bf16.msra.mxu1 %v687_v11  ;;  %706 = vmatpush.bf16.msra.mxu3 %v687_v11 }
  0x1a   :  { %157 = vmatpush.bf16.msra.mxu0 %v670_v12  ;;  %699 = vmatpush.bf16.msra.mxu2 %v670_v12 }
  0x1b   :  { %400 = vmatpush.bf16.msra.mxu1 %v686_v13  ;;  %707 = vmatpush.bf16.msra.mxu3 %v686_v13 }
  0x1e   :  { %158 = vmatpush.bf16.msra.mxu0 %v669_v14  ;;  %700 = vmatpush.bf16.msra.mxu2 %v669_v14 }
  0x1f   :  { %401 = vmatpush.bf16.msra.mxu1 %v685_v15  ;;  %708 = vmatpush.bf16.msra.mxu3 %v685_v15 }
  0x21   :  { %159 = vmatmul.bf16.vlgmr.msra.gmra.mxu0 %v661_v16  ;;  %179 = vmatmul.bf16.vlgmr.msra.gmra.mxu2 %v665_v18 }
  0x22   :  { %402 = vmatmul.bf16.vlgmr.msra.gmra.mxu1 %v677_v17  ;;  %422 = vmatmul.bf16.vlgmr.msra.gmra.mxu3 %v681_v19 }
  0x31   :  { %164 = vmatmul.bf16.gmra.mxu0 %v662_v20  ;;  %184 = vmatmul.bf16.gmra.mxu2 %v666_v22 }
  0x32   :  { %407 = vmatmul.bf16.gmra.mxu1 %v678_v21  ;;  %427 = vmatmul.bf16.gmra.mxu3 %v682_v23 }
  0x41   :  { %169 = vmatmul.bf16.gmra.mxu0 %v663_v24  ;;  %189 = vmatmul.bf16.gmra.mxu2 %v667_v26 }
  0x42   :  { %412 = vmatmul.bf16.gmra.mxu1 %v679_v25  ;;  %432 = vmatmul.bf16.gmra.mxu3 %v683_v27 }
  0x51   :  { %174 = vmatmul.bf16.gmra.mxu0 %v664_v28  ;;  %194 = vmatmul.bf16.gmra.mxu2 %v668_v30 }
  0x52   :  { %417 = vmatmul.bf16.gmra.mxu1 %v680_v29  ;;  %437 = vmatmul.bf16.gmra.mxu3 %v684_v31 }
  0x9e   :  { %v160_v32 = vpop.f32.mrf.mxu0 }
  0x9f   :  { %v403_v33 = vpop.f32.mrf.mxu1  ;;  %200 = vst [vmem:[%s1039_s4] sm:$0xff] %v160_v32  ;;  %v217_v56 = vmul.f32 %v160_v32, %v160_v32 }
  0xa0   :  { %443 = vst [vmem:[%s1040_s5] sm:$0xff] %v403_v33  ;;  %v460_v57 = vmul.f32 %v403_v33, %v403_v33 }
  0xa4   :  { %v861_v34 = vpop.f32.mrf.mxu2 }
  0xa5   :  { %v863_v35 = vpop.f32.mrf.mxu3  ;;  %208 = vst [vmem:[%s1039_s4 + $0x40] sm:$0xff] %v861_v34 }
  0xa6   :  { %v162_v36 = vpop.f32.mrf.mxu0  ;;  %451 = vst [vmem:[%s1040_s5 + $0x40] sm:$0xff] %v863_v35 }
  0xa7   :  { %v405_v37 = vpop.f32.mrf.mxu1  ;;  %201 = vst [vmem:[%s1039_s4 + $0x8] sm:$0xff] %v162_v36  ;;  %v220_v54 = vmul.f32 %v162_v36, %v162_v36  ;;  %v219_v60 = vadd.f32 %v162_v36, %v160_v32 }
  0xa8   :  { %444 = vst [vmem:[%s1040_s5 + $0x8] sm:$0xff] %v405_v37  ;;  %v463_v55 = vmul.f32 %v405_v37, %v405_v37  ;;  %v462_v61 = vadd.f32 %v405_v37, %v403_v33 }
  0xa9   :  { %v221_v62 = vadd.f32 %v220_v54, %v217_v56 }
  0xaa   :  { %v464_v63 = vadd.f32 %v463_v55, %v460_v57 }
  0xac   :  { %v879_v38 = vpop.f32.mrf.mxu2 }
  0xad   :  { %v881_v39 = vpop.f32.mrf.mxu3  ;;  %209 = vst [vmem:[%s1039_s4 + $0x48] sm:$0xff] %v879_v38  ;;  %v244_v56 = vmul.f32 %v879_v38, %v879_v38 }
  0xae   :  { %v165_v40 = vpop.f32.mrf.mxu0  ;;  %452 = vst [vmem:[%s1040_s5 + $0x48] sm:$0xff] %v881_v39  ;;  %v487_v57 = vmul.f32 %v881_v39, %v881_v39 }
  0xaf   :  { %v408_v41 = vpop.f32.mrf.mxu1  ;;  %202 = vst [vmem:[%s1039_s4 + $0x10] sm:$0xff] %v165_v40  ;;  %v223_v58 = vmul.f32 %v165_v40, %v165_v40  ;;  %v222_v2 = vadd.f32 %v219_v60, %v165_v40 }
  0xb0   :  { %445 = vst [vmem:[%s1040_s5 + $0x10] sm:$0xff] %v408_v41  ;;  %v466_v59 = vmul.f32 %v408_v41, %v408_v41  ;;  %v465_v3 = vadd.f32 %v462_v61, %v408_v41 }
  0xb1   :  { %v224_v6 = vadd.f32 %v223_v58, %v221_v62 }
  0xb2   :  { %v467_v7 = vadd.f32 %v466_v59, %v464_v63 }
  0xb4   :  { %v897_v42 = vpop.f32.mrf.mxu2 }
  0xb5   :  { %v899_v43 = vpop.f32.mrf.mxu3  ;;  %210 = vst [vmem:[%s1039_s4 + $0x50] sm:$0xff] %v897_v42 }
  0xb6   :  { %v167_v44 = vpop.f32.mrf.mxu0  ;;  %453 = vst [vmem:[%s1040_s5 + $0x50] sm:$0xff] %v899_v43 }
  0xb7   :  { %v410_v45 = vpop.f32.mrf.mxu1  ;;  %203 = vst [vmem:[%s1039_s4 + $0x18] sm:$0xff] %v167_v44  ;;  %v226_v0 = vmul.f32 %v167_v44, %v167_v44  ;;  %v225_v12 = vadd.f32 %v222_v2, %v167_v44 }
  0xb8   :  { %446 = vst [vmem:[%s1040_s5 + $0x18] sm:$0xff] %v410_v45  ;;  %v469_v1 = vmul.f32 %v410_v45, %v410_v45  ;;  %v468_v13 = vadd.f32 %v465_v3, %v410_v45 }
  0xb9   :  { %v227_v14 = vadd.f32 %v226_v0, %v224_v6 }
  0xba   :  { %v470_v15 = vadd.f32 %v469_v1, %v467_v7 }
  0xbc   :  { %v915_v46 = vpop.f32.mrf.mxu2 }
  0xbd   :  { %v917_v47 = vpop.f32.mrf.mxu3  ;;  %211 = vst [vmem:[%s1039_s4 + $0x58] sm:$0xff] %v915_v46 }
  0xbe   :  { %v170_v48 = vpop.f32.mrf.mxu0  ;;  %454 = vst [vmem:[%s1040_s5 + $0x58] sm:$0xff] %v917_v47 }
  0xbf   :  { %v413_v49 = vpop.f32.mrf.mxu1  ;;  %204 = vst [vmem:[%s1039_s4 + $0x20] sm:$0xff] %v170_v48  ;;  %v229_v8 = vmul.f32 %v170_v48, %v170_v48  ;;  %v228_v18 = vadd.f32 %v225_v12, %v170_v48  ;;  %v241_v48 = vmul.f32 %v861_v34, %v861_v34 }
  0xc0   :  { %447 = vst [vmem:[%s1040_s5 + $0x20] sm:$0xff] %v413_v49  ;;  %v472_v9 = vmul.f32 %v413_v49, %v413_v49  ;;  %v471_v19 = vadd.f32 %v468_v13, %v413_v49  ;;  %v484_v49 = vmul.f32 %v863_v35, %v863_v35 }
  0xc1   :  { %v230_v20 = vadd.f32 %v229_v8, %v227_v14 }
  0xc2   :  { %v473_v21 = vadd.f32 %v472_v9, %v470_v15 }
  0xc4   :  { %v933_v50 = vpop.f32.mrf.mxu2 }
  0xc5   :  { %v935_v51 = vpop.f32.mrf.mxu3  ;;  %212 = vst [vmem:[%s1039_s4 + $0x60] sm:$0xff] %v933_v50 }
  0xc6   :  { %v172_v52 = vpop.f32.mrf.mxu0  ;;  %455 = vst [vmem:[%s1040_s5 + $0x60] sm:$0xff] %v935_v51  ;;  %v496_v9 = vmul.f32 %v935_v51, %v935_v51 }
  0xc7   :  { %v415_v53 = vpop.f32.mrf.mxu1  ;;  %205 = vst [vmem:[%s1039_s4 + $0x28] sm:$0xff] %v172_v52  ;;  %v232_v16 = vmul.f32 %v172_v52, %v172_v52  ;;  %v231_v24 = vadd.f32 %v228_v18, %v172_v52 }
  0xc8   :  { %448 = vst [vmem:[%s1040_s5 + $0x28] sm:$0xff] %v415_v53  ;;  %v475_v17 = vmul.f32 %v415_v53, %v415_v53  ;;  %v474_v25 = vadd.f32 %v471_v19, %v415_v53 }
  0xc9   :  { %v233_v26 = vadd.f32 %v232_v16, %v230_v20 }
  0xca   :  { %v476_v27 = vadd.f32 %v475_v17, %v473_v21 }
  0xcc   :  { %v951_v4 = vpop.f32.mrf.mxu2 }
  0xcd   :  { %v953_v5 = vpop.f32.mrf.mxu3  ;;  %213 = vst [vmem:[%s1039_s4 + $0x68] sm:$0xff] %v951_v4 }
  0xce   :  { %v175_v10 = vpop.f32.mrf.mxu0  ;;  %456 = vst [vmem:[%s1040_s5 + $0x68] sm:$0xff] %v953_v5 }
  0xcf   :  { %v418_v11 = vpop.f32.mrf.mxu1  ;;  %206 = vst [vmem:[%s1039_s4 + $0x30] sm:$0xff] %v175_v10  ;;  %v235_v22 = vmul.f32 %v175_v10, %v175_v10  ;;  %v234_v28 = vadd.f32 %v231_v24, %v175_v10 }
  0xd0   :  { %449 = vst [vmem:[%s1040_s5 + $0x30] sm:$0xff] %v418_v11  ;;  %v478_v23 = vmul.f32 %v418_v11, %v418_v11  ;;  %v477_v29 = vadd.f32 %v474_v25, %v418_v11 }
  0xd1   :  { %v236_v32 = vadd.f32 %v235_v22, %v233_v26 }
  0xd2   :  { %v479_v33 = vadd.f32 %v478_v23, %v476_v27 }
  0xd4   :  { %v195_v30 = vpop.f32.mrf.mxu2 }
  0xd5   :  { %v438_v31 = vpop.f32.mrf.mxu3  ;;  %214 = vst [vmem:[%s1039_s4 + $0x70] sm:$0xff] %v195_v30  ;;  %v259_v18 = vmul.f32 %v195_v30, %v195_v30 }
  0xd6   :  { %v177_v36 = vpop.f32.mrf.mxu0  ;;  %457 = vst [vmem:[%s1040_s5 + $0x70] sm:$0xff] %v438_v31  ;;  %v502_v19 = vmul.f32 %v438_v31, %v438_v31 }
  0xd7   :  { %v420_v37 = vpop.f32.mrf.mxu1  ;;  %207 = vst [vmem:[%s1039_s4 + $0x38] sm:$0xff] %v177_v36  ;;  %v237_v40 = vadd.f32 %v234_v28, %v177_v36  ;;  %v238_v41 = vmul.f32 %v177_v36, %v177_v36 }
  0xd8   :  { %v480_v44 = vadd.f32 %v477_v29, %v420_v37  ;;  %v481_v45 = vmul.f32 %v420_v37, %v420_v37  ;;  %450 = vst [vmem:[%s1040_s5 + $0x38] sm:$0xff] %v420_v37 }
  0xd9   :  { %v239_v52 = vadd.f32 %v238_v41, %v236_v32  ;;  %v240_v53 = vadd.f32 %v237_v40, %v861_v34  ;;  %v247_v34 = vmul.f32 %v897_v42, %v897_v42 }
  0xda   :  { %v482_v54 = vadd.f32 %v481_v45, %v479_v33  ;;  %v483_v55 = vadd.f32 %v480_v44, %v863_v35  ;;  %v490_v35 = vmul.f32 %v899_v43, %v899_v43 }
  0xdb   :  { %v242_v58 = vadd.f32 %v241_v48, %v239_v52  ;;  %v243_v59 = vadd.f32 %v240_v53, %v879_v38  ;;  %v250_v38 = vmul.f32 %v915_v46, %v915_v46 }
  0xdc   :  { %v485_v60 = vadd.f32 %v484_v49, %v482_v54  ;;  %v486_v61 = vadd.f32 %v483_v55, %v881_v39  ;;  %v197_v2 = vpop.f32.mrf.mxu2  ;;  %v493_v39 = vmul.f32 %v917_v47, %v917_v47 }
  0xdd   :  { %v245_v62 = vadd.f32 %v244_v56, %v242_v58  ;;  %v246_v63 = vadd.f32 %v243_v59, %v897_v42  ;;  %v440_v3 = vpop.f32.mrf.mxu3  ;;  %215 = vst [vmem:[%s1039_s4 + $0x78] sm:$0xff] %v197_v2  ;;  %v262_v23 = vmul.f32 %v197_v2, %v197_v2 }
  0xde   :  { %v488_v0 = vadd.f32 %v487_v57, %v485_v60  ;;  %v489_v1 = vadd.f32 %v486_v61, %v899_v43  ;;  %458 = vst [vmem:[%s1040_s5 + $0x78] sm:$0xff] %v440_v3  ;;  %v253_v43 = vmul.f32 %v933_v50, %v933_v50 }
  0xdf   :  { %v248_v6 = vadd.f32 %v247_v34, %v245_v62  ;;  %v249_v7 = vadd.f32 %v246_v63, %v915_v46  ;;  %v256_v46 = vmul.f32 %v951_v4, %v951_v4 }
  0xe0   :  { %v491_v8 = vadd.f32 %v490_v35, %v488_v0  ;;  %v492_v42 = vadd.f32 %v489_v1, %v917_v47  ;;  %v499_v47 = vmul.f32 %v953_v5, %v953_v5 }
  0xe1   :  { %v251_v10 = vadd.f32 %v250_v38, %v248_v6  ;;  %v252_v11 = vadd.f32 %v249_v7, %v933_v50 }
  0xe2   :  { %v494_v12 = vadd.f32 %v493_v39, %v491_v8  ;;  %v495_v13 = vadd.f32 %v492_v42, %v935_v51  ;;  %v505_v51 = vmul.f32 %v440_v3, %v440_v3 }
  0xe3   :  { %v254_v14 = vadd.f32 %v253_v43, %v251_v10  ;;  %v255_v15 = vadd.f32 %v252_v11, %v951_v4 }
  0xe4   :  { %v497_v16 = vadd.f32 %v496_v9, %v494_v12  ;;  %v498_v17 = vadd.f32 %v495_v13, %v953_v5 }
  0xe5   :  { %v257_v20 = vadd.f32 %v256_v46, %v254_v14  ;;  %v258_v21 = vadd.f32 %v255_v15, %v195_v30 }
  0xe6   :  { %v500_v50 = vadd.f32 %v499_v47, %v497_v16  ;;  %v501_v22 = vadd.f32 %v498_v17, %v438_v31 }
  0xe7   :  { %v260_v24 = vadd.f32 %v259_v18, %v257_v20  ;;  %v261_v26 = vadd.f32 %v258_v21, %v197_v2 }
  0xe8   :  { %v503_v25 = vadd.f32 %v502_v19, %v500_v50  ;;  %v504_v27 = vadd.f32 %v501_v22, %v440_v3 }
  0xe9   :  { %v263_v28 = vadd.f32 %v262_v23, %v260_v24  ;;  %264 = vst [vmem:[%s1041_s6] sm:$0xff] %v261_v26 }
  0xea   :  { %v506_v4 = vadd.f32 %v505_v51, %v503_v25  ;;  %507 = vst [vmem:[%s1042_s8] sm:$0xff] %v504_v27 }
  0xeb   :  { %265 = vst [vmem:[%s1043_s7] sm:$0xff] %v263_v28 }
  0xec   :  { %508 = vst [vmem:[%s1044_s9] sm:$0xff] %v506_v4 }

</bundles_post_ra>
